<compile_context>
chip_gen: v5e
topology: v5e:2x2
jax: 0.10.0
libtpu: 0.0.40
codegen_flags: <defaults>
</compile_context>

<pallas_src>
import jax
import jax.numpy as jnp
from jax.experimental import pallas as pl
from jax.experimental.pallas import tpu as pltpu


LANE = 128


def _round_up(n, m):
    return ((n + m - 1) // m) * m


def _softplus(x):
    # Matches torch.nn.Softplus(beta=1, threshold=20): x > 20 -> x, else log1p(exp(x)).
    return jnp.where(x > 20.0, x, jnp.log1p(jnp.exp(x)))


def _pad2(a, rows, cols):
    return jnp.pad(a, ((0, rows - a.shape[0]), (0, cols - a.shape[1])))


def _make_kernel(n_layers, compute_dtype):
    """Kernel over one (TB, F_pad) batch tile; weights/biases resident in VMEM."""

    def kernel(x_ref, *refs):
        out_ref = refs[-1]
        wb_refs = refs[:-1]

        h = x_ref[...]  # already compute_dtype (bf16)
        for li in range(n_layers):
            w = wb_refs[2 * li][...]        # compute_dtype, (in_pad, out_pad)
            b = wb_refs[2 * li + 1][...]    # f32, (1, out_pad)
            acc = jnp.dot(h.astype(compute_dtype), w,
                          preferred_element_type=jnp.float32)
            h = acc + b                      # f32 bias add (broadcast over sublanes)
            if li == n_layers - 2:
                h = jax.nn.sigmoid(h)        # f32 epilogue (v5e VPU/EUP are f32-only)

        out_ref[...] = _softplus(h).astype(out_ref.dtype)

    return kernel


def classifier_forward(x, params, *, tb=128, compute_dtype=jnp.bfloat16):
    """params: list of (W, b) with W shaped (in, out), b shaped (1, out), f32."""
    batch, feat = x.shape
    classes = params[-1][0].shape[1]
    n_layers = len(params)

    # Padded (lane-dense) layer widths.
    dims = [feat] + [w.shape[1] for w, _ in params]
    pdims = [_round_up(d, LANE) for d in dims]

    # Batch tile: at least 8 rows, no larger than the (rounded) batch.
    tb = max(8, min(tb, _round_up(batch, 8)))
    pbatch = _round_up(batch, tb)
    grid = (pbatch // tb,)

    # Pad + cast input activations once in the wrapper (halves x DMA bytes).
    xp = _pad2(x, pbatch, pdims[0]).astype(compute_dtype)

    flat_inputs = [xp]
    in_specs = [pl.BlockSpec((tb, pdims[0]), lambda i: (i, 0))]

    for li, (w, b) in enumerate(params):
        wp = _pad2(w, pdims[li], pdims[li + 1]).astype(compute_dtype)  # bf16 weights
        bp = _pad2(b, 1, pdims[li + 1]).astype(jnp.float32)            # f32 biases
        flat_inputs += [wp, bp]
        # Constant index_map -> weights/biases stay resident across grid steps.
        in_specs += [pl.BlockSpec(wp.shape, lambda i: (0, 0)),
                     pl.BlockSpec(bp.shape, lambda i: (0, 0))]

    out_pad = pdims[-1]
    out_spec = pl.BlockSpec((tb, out_pad), lambda i: (i, 0))

    # VMEM budget: resident weights + double-buffered x/out tiles + working set,
    # clamped under v7x's 64 MiB physical VMEM.
    cbytes = jnp.dtype(compute_dtype).itemsize
    w_bytes = sum(pdims[i] * pdims[i + 1] * cbytes for i in range(n_layers))
    b_bytes = sum(pdims[i + 1] * 4 for i in range(n_layers))
    io_bytes = 2 * tb * (pdims[0] * cbytes + out_pad * 4)
    act_bytes = 4 * tb * max(pdims) * 4
    est = w_bytes + b_bytes + io_bytes + act_bytes
    vmem_limit = int(min(max(2 * est, 32 * 2**20), 48 * 2**20))

    out_padded = pl.pallas_call(
        _make_kernel(n_layers, compute_dtype),
        out_shape=jax.ShapeDtypeStruct((pbatch, out_pad), jnp.float32),
        grid=grid,
        in_specs=in_specs,
        out_specs=out_spec,
        compiler_params=pltpu.CompilerParams(
            dimension_semantics=("parallel",),
            vmem_limit_bytes=vmem_limit,
        ),
    )(*flat_inputs)

    return out_padded[:batch, :classes]


def init_params(key, classifier_dims, classes):
    """Synthetic parameters matching the torch module's shapes.

    Layers: Linear(dims[i]->dims[i+1]) for i in range(len(dims)-1),
            Linear(dims[-1]->64), Linear(64->classes).
    Weights stored as (in, out); biases as (1, out).
    """
    sizes = []
    for i in range(len(classifier_dims) - 1):
        sizes.append((classifier_dims[i], classifier_dims[i + 1]))
    sizes.append((classifier_dims[-1], 64))
    sizes.append((64, classes))

    params = []
    for (fan_in, fan_out) in sizes:
        key, kw, kb = jax.random.split(key, 3)
        bound = 1.0 / jnp.sqrt(fan_in)
        w = jax.random.uniform(kw, (fan_in, fan_out), jnp.float32, -bound, bound)
        b = jax.random.uniform(kb, (1, fan_out), jnp.float32, -bound, bound)
        params.append((w, b))
    return params


def reference_forward(x, params, compute_dtype=jnp.bfloat16):
    """Pure-JAX reference mirroring the kernel's bf16-matmul / f32-accumulate path."""
    h = x
    n = len(params)
    for i, (w, b) in enumerate(params):
        h = jnp.dot(h.astype(compute_dtype), w.astype(compute_dtype),
                    preferred_element_type=jnp.float32) + b
        if i == n - 2:   # after Linear(dims[-1] -> 64)
            h = jax.nn.sigmoid(h)
    return _softplus(h)


if __name__ == "__main__":
    # Small, module-consistent shapes; batch chosen so the grid has >1 step and
    # exercises batch padding (200 -> 256 with TB=128).
    classifier_dims = [32, 64, 32]   # two stacked Linears: 32->64, 64->32
    classes = 16
    batch = 200

    key = jax.random.PRNGKey(0)
    key, kx = jax.random.split(key)
    x = jax.random.normal(kx, (batch, classifier_dims[0]), jnp.float32)

    params = init_params(key, classifier_dims, classes)

    # TODO(synk): training-mode Dropout (stochastic masking) intentionally not
    # implemented; inference forward treats both Dropout layers as identity.
    out = classifier_forward(x, params, tb=128)
    out = jax.block_until_ready(out)

    ref = reference_forward(x, params)
    assert out.shape == (batch, classes), out.shape
    max_err = jnp.max(jnp.abs(out - ref))
    assert jnp.allclose(out, ref, atol=2e-3, rtol=2e-3), f"max abs err = {max_err}"

    print("KERNEL_OK")
</pallas_src>

<mosaic_0001>
module attributes {stable_mosaic.version = 11 : i64} {
  func.func @kernel(%arg0: i32, %arg1: memref<128x128xbf16, #tpu.memory_space<vmem>>, %arg2: memref<128x128xbf16, #tpu.memory_space<vmem>>, %arg3: memref<1x128xf32, #tpu.memory_space<vmem>>, %arg4: memref<128x128xbf16, #tpu.memory_space<vmem>>, %arg5: memref<1x128xf32, #tpu.memory_space<vmem>>, %arg6: memref<128x128xbf16, #tpu.memory_space<vmem>>, %arg7: memref<1x128xf32, #tpu.memory_space<vmem>>, %arg8: memref<128x128xbf16, #tpu.memory_space<vmem>>, %arg9: memref<1x128xf32, #tpu.memory_space<vmem>>, %arg10: memref<128x128xf32, #tpu.memory_space<vmem>>) attributes {dimension_semantics = [#tpu.dimension_semantics<parallel>], iteration_bounds = array<i64: 2>, scalar_prefetch = 0 : i64, scratch_operands = 0 : i64, tpu.core_type = #tpu.core_type<tc>, window_params = [{transform_indices = @transform_0, window_bounds = array<i64: 128, 128>}, {pipeline_mode = #tpu.pipeline_mode<synchronous>, transform_indices = @transform_1, window_bounds = array<i64: 128, 128>}, {pipeline_mode = #tpu.pipeline_mode<synchronous>, transform_indices = @transform_2, window_bounds = array<i64: 1, 128>}, {pipeline_mode = #tpu.pipeline_mode<synchronous>, transform_indices = @transform_3, window_bounds = array<i64: 128, 128>}, {pipeline_mode = #tpu.pipeline_mode<synchronous>, transform_indices = @transform_4, window_bounds = array<i64: 1, 128>}, {pipeline_mode = #tpu.pipeline_mode<synchronous>, transform_indices = @transform_5, window_bounds = array<i64: 128, 128>}, {pipeline_mode = #tpu.pipeline_mode<synchronous>, transform_indices = @transform_6, window_bounds = array<i64: 1, 128>}, {pipeline_mode = #tpu.pipeline_mode<synchronous>, transform_indices = @transform_7, window_bounds = array<i64: 128, 128>}, {pipeline_mode = #tpu.pipeline_mode<synchronous>, transform_indices = @transform_8, window_bounds = array<i64: 1, 128>}, {transform_indices = @transform_9, window_bounds = array<i64: 128, 128>}]} {
    %c0 = arith.constant 0 : index
    %c0_0 = arith.constant 0 : index
    %0 = vector.load %arg1[%c0, %c0_0] : memref<128x128xbf16, #tpu.memory_space<vmem>>, vector<128x128xbf16>
    %c0_1 = arith.constant 0 : index
    %c0_2 = arith.constant 0 : index
    %1 = vector.load %arg2[%c0_1, %c0_2] : memref<128x128xbf16, #tpu.memory_space<vmem>>, vector<128x128xbf16>
    %c0_3 = arith.constant 0 : index
    %c0_4 = arith.constant 0 : index
    %2 = vector.load %arg3[%c0_3, %c0_4] : memref<1x128xf32, #tpu.memory_space<vmem>>, vector<1x128xf32>
    %cst = arith.constant dense<0.000000e+00> : vector<128x128xf32>
    %3 = tpu.matmul %0, %1, %cst {dimension_numbers = #tpu.dot_dimension_numbers<[1], [0], [0], [1], [0, 0, 1, 1], [], []>} : vector<128x128xbf16>, vector<128x128xbf16>, vector<128x128xf32> -> vector<128x128xf32>
    %4 = vector.broadcast %2 : vector<1x128xf32> to vector<128x128xf32>
    %5 = arith.addf %3, %4 : vector<128x128xf32>
    %c0_5 = arith.constant 0 : index
    %c0_6 = arith.constant 0 : index
    %6 = vector.load %arg4[%c0_5, %c0_6] : memref<128x128xbf16, #tpu.memory_space<vmem>>, vector<128x128xbf16>
    %c0_7 = arith.constant 0 : index
    %c0_8 = arith.constant 0 : index
    %7 = vector.load %arg5[%c0_7, %c0_8] : memref<1x128xf32, #tpu.memory_space<vmem>>, vector<1x128xf32>
    %8 = arith.truncf %5 : vector<128x128xf32> to vector<128x128xbf16>
    %cst_9 = arith.constant dense<0.000000e+00> : vector<128x128xf32>
    %9 = tpu.matmul %8, %6, %cst_9 {dimension_numbers = #tpu.dot_dimension_numbers<[1], [0], [0], [1], [0, 0, 1, 1], [], []>} : vector<128x128xbf16>, vector<128x128xbf16>, vector<128x128xf32> -> vector<128x128xf32>
    %10 = vector.broadcast %7 : vector<1x128xf32> to vector<128x128xf32>
    %11 = arith.addf %9, %10 : vector<128x128xf32>
    %c0_10 = arith.constant 0 : index
    %c0_11 = arith.constant 0 : index
    %12 = vector.load %arg6[%c0_10, %c0_11] : memref<128x128xbf16, #tpu.memory_space<vmem>>, vector<128x128xbf16>
    %c0_12 = arith.constant 0 : index
    %c0_13 = arith.constant 0 : index
    %13 = vector.load %arg7[%c0_12, %c0_13] : memref<1x128xf32, #tpu.memory_space<vmem>>, vector<1x128xf32>
    %14 = arith.truncf %11 : vector<128x128xf32> to vector<128x128xbf16>
    %cst_14 = arith.constant dense<0.000000e+00> : vector<128x128xf32>
    %15 = tpu.matmul %14, %12, %cst_14 {dimension_numbers = #tpu.dot_dimension_numbers<[1], [0], [0], [1], [0, 0, 1, 1], [], []>} : vector<128x128xbf16>, vector<128x128xbf16>, vector<128x128xf32> -> vector<128x128xf32>
    %16 = vector.broadcast %13 : vector<1x128xf32> to vector<128x128xf32>
    %17 = arith.addf %15, %16 : vector<128x128xf32>
    %18 = arith.negf %17 : vector<128x128xf32>
    %19 = math.exp %18 : vector<128x128xf32>
    %cst_15 = arith.constant 1.000000e+00 : f32
    %20 = vector.broadcast %cst_15 : f32 to vector<128x128xf32>
    %21 = arith.addf %20, %19 : vector<128x128xf32>
    %22 = arith.divf %20, %21 : vector<128x128xf32>
    %c0_16 = arith.constant 0 : index
    %c0_17 = arith.constant 0 : index
    %23 = vector.load %arg8[%c0_16, %c0_17] : memref<128x128xbf16, #tpu.memory_space<vmem>>, vector<128x128xbf16>
    %c0_18 = arith.constant 0 : index
    %c0_19 = arith.constant 0 : index
    %24 = vector.load %arg9[%c0_18, %c0_19] : memref<1x128xf32, #tpu.memory_space<vmem>>, vector<1x128xf32>
    %25 = arith.truncf %22 : vector<128x128xf32> to vector<128x128xbf16>
    %cst_20 = arith.constant dense<0.000000e+00> : vector<128x128xf32>
    %26 = tpu.matmul %25, %23, %cst_20 {dimension_numbers = #tpu.dot_dimension_numbers<[1], [0], [0], [1], [0, 0, 1, 1], [], []>} : vector<128x128xbf16>, vector<128x128xbf16>, vector<128x128xf32> -> vector<128x128xf32>
    %27 = vector.broadcast %24 : vector<1x128xf32> to vector<128x128xf32>
    %28 = arith.addf %26, %27 : vector<128x128xf32>
    %cst_21 = arith.constant 2.000000e+01 : f32
    %29 = vector.broadcast %cst_21 : f32 to vector<128x128xf32>
    %30 = arith.cmpf ogt, %28, %29 : vector<128x128xf32>
    %31 = math.exp %28 : vector<128x128xf32>
    %32 = math.log1p %31 : vector<128x128xf32>
    %33 = arith.select %30, %28, %32 : vector<128x128xi1>, vector<128x128xf32>
    %c0_22 = arith.constant 0 : index
    %c0_23 = arith.constant 0 : index
    %34 = vector.load %arg10[%c0_22, %c0_23] : memref<128x128xf32, #tpu.memory_space<vmem>>, vector<128x128xf32>
    tpu.vector_store %arg10[%c0_22, %c0_23], %33 {strides = array<i32>} : memref<128x128xf32, #tpu.memory_space<vmem>>, vector<128x128xf32>,
    return
  }
  func.func @transform_0(%arg0: i32) -> (i32, i32) {
    %c0_i32 = arith.constant 0 : i32
    %c0_i32_0 = arith.constant 0 : i32
    return %arg0, %c0_i32 : i32, i32
  }
  func.func @transform_1(%arg0: i32) -> (i32, i32) {
    %c0_i32 = arith.constant 0 : i32
    %c0_i32_0 = arith.constant 0 : i32
    %c0_i32_1 = arith.constant 0 : i32
    return %c0_i32, %c0_i32_0 : i32, i32
  }
  func.func @transform_2(%arg0: i32) -> (i32, i32) {
    %c0_i32 = arith.constant 0 : i32
    %c0_i32_0 = arith.constant 0 : i32
    %c0_i32_1 = arith.constant 0 : i32
    return %c0_i32, %c0_i32_0 : i32, i32
  }
  func.func @transform_3(%arg0: i32) -> (i32, i32) {
    %c0_i32 = arith.constant 0 : i32
    %c0_i32_0 = arith.constant 0 : i32
    %c0_i32_1 = arith.constant 0 : i32
    return %c0_i32, %c0_i32_0 : i32, i32
  }
  func.func @transform_4(%arg0: i32) -> (i32, i32) {
    %c0_i32 = arith.constant 0 : i32
    %c0_i32_0 = arith.constant 0 : i32
    %c0_i32_1 = arith.constant 0 : i32
    return %c0_i32, %c0_i32_0 : i32, i32
  }
  func.func @transform_5(%arg0: i32) -> (i32, i32) {
    %c0_i32 = arith.constant 0 : i32
    %c0_i32_0 = arith.constant 0 : i32
    %c0_i32_1 = arith.constant 0 : i32
    return %c0_i32, %c0_i32_0 : i32, i32
  }
  func.func @transform_6(%arg0: i32) -> (i32, i32) {
    %c0_i32 = arith.constant 0 : i32
    %c0_i32_0 = arith.constant 0 : i32
    %c0_i32_1 = arith.constant 0 : i32
    return %c0_i32, %c0_i32_0 : i32, i32
  }
  func.func @transform_7(%arg0: i32) -> (i32, i32) {
    %c0_i32 = arith.constant 0 : i32
    %c0_i32_0 = arith.constant 0 : i32
    %c0_i32_1 = arith.constant 0 : i32
    return %c0_i32, %c0_i32_0 : i32, i32
  }
  func.func @transform_8(%arg0: i32) -> (i32, i32) {
    %c0_i32 = arith.constant 0 : i32
    %c0_i32_0 = arith.constant 0 : i32
    %c0_i32_1 = arith.constant 0 : i32
    return %c0_i32, %c0_i32_0 : i32, i32
  }
  func.func @transform_9(%arg0: i32) -> (i32, i32) {
    %c0_i32 = arith.constant 0 : i32
    %c0_i32_0 = arith.constant 0 : i32
    return %arg0, %c0_i32 : i32, i32
  }
}

</mosaic_0001>

<bundles_post_ra>
// kernel: tpu_custom_call.1
= control target key start
LH: loop header
LB: loop body
LE: loop exit
PB: predicated region body
PF: predicated region fallthrough
CT: control target
= control target key end

     0   :  { %s2719_s0 = inlined_call_operand.hbm [shape: bf16[256,128], index: 0, kind: input, shape index: {}]   ;;  %s2720_s1 = inlined_call_operand.hbm [shape: bf16[128,128], index: 1, kind: input, shape index: {}]   ;;  %s2721_s2 = inlined_call_operand.vmem [shape: f32[1,128], index: 2, kind: input, shape index: {}]   ;;  %s2722_s3 = inlined_call_operand.hbm [shape: bf16[128,128], index: 3, kind: input, shape index: {}]   ;;  %s2723_s4 = inlined_call_operand.vmem [shape: f32[1,128], index: 4, kind: input, shape index: {}]   ;;  %s2724_s5 = inlined_call_operand.hbm [shape: bf16[128,128], index: 5, kind: input, shape index: {}]   ;;  %s2725_s6 = inlined_call_operand.vmem [shape: f32[1,128], index: 6, kind: input, shape index: {}]   ;;  %s2726_s7 = inlined_call_operand.hbm [shape: bf16[128,128], index: 7, kind: input, shape index: {}]   ;;  %s2727_s8 = inlined_call_operand.vmem [shape: f32[1,128], index: 8, kind: input, shape index: {}]   ;;  %s2728_s9 = inlined_call_operand.hbm [shape: f32[256,128], index: 9, kind: output, shape index: {}]  }
   0x1   :  { %2731 = sst [smem:[#allocation16_spill]] %s2720_s1 }
   0x2   :  { %2732 = sst [smem:[#allocation17_spill]] %s2722_s3 }
   0x3   :  { %2733 = sst [smem:[#allocation18_spill]] %s2724_s5 }
   0x4   :  { %14 = vsyncpa [#allocation3], 0 }
   0x5   :  { %16 = vsyncpa [#allocation3 + $0x1], 0 }
   0x6   :  { %17 = vsyncpa [#allocation6], 0 }
   0x7   :  { %18 = vsyncpa [#allocation9], 0 }
   0x8   :  { %19 = vsyncpa [#allocation4], 0 }
   0x9   :  { %21 = vsyncpa [#allocation4 + $0x1], 0  ;;  %s2379_s30 = smov 0   ;;  %s2381_s10 = smov 0  }
   0xa   :  { %s2383_s11 = smov 0   ;;  %s2385_s12 = smov 0  }
   0xb LB: > { %s2400_s13 = sadd.s32 4294967295, %s2319_s12   ;;  %s1632_s14 = sadd.s32 4294967294, %s2319_s12   ;;  %s2319_s12 = sphi %s2385_s12, %s2763_s12   ;;  %s2315_s11 = sphi %s2383_s11, %s2762_s11   ;;  %s2311_s10 = sphi %s2381_s10, %s2761_s10   ;;  %s2307_s30 = sphi %s2379_s30, %s2760_s30  }
   0xc   : > { %p47_p0 = scmp.ne.s32.totalorder %s2311_s10, %s2307_s30  ;;  %p48_p1 = scmp.eq.s32.totalorder %s2400_s13, 0 }
   0xd   : > { %p239_p2 = scmp.eq.s32.totalorder %s2400_s13, 1  ;;  %p245_p3 = scmp.eq.s32.totalorder %s1632_s14, 1 }
   0xe   : > { %p2409_p4 = por %p48_p1, %p47_p0  ;;  %p1633_p5 = scmp.ge.s32.totalorder %s2319_s12, 1 }
   0xf   : > { %p2414_p6 = por %p245_p3, %p47_p0  ;;  %p252_p7 = scmp.lt.s32.totalorder %s2319_s12, 3 }
  0x10   : > { %s2736_s1 = sld [smem:[#allocation16_spill]]  ;;  %s2321_s21 = smov [#allocation5]  }
  0x11   : > { %p2422_p8 = pnand %p1633_p5, %p252_p7  ;;  %s265_s22 = sshll.u32 %s2321_s21, 4  ;;  %s266_s22 = int_to_ptr.vmem [resolvable:$true] %s265_s22 }
  0x12   : > { %s2739_s5 = sld [smem:[#allocation18_spill]]  ;;  %s2729_s27 = smov 64  }
  0x13   : > { %p1892_p9 = pneg %p2422_p8  ;;  %s2730_s28 = smov 4  }
  0x14   : > { %s2324_s29 = smov [#allocation8]   ;;  %s2740_s3 = sld [smem:[#allocation17_spill]] }
  0x15   : > { %p2430_p10 = pnand %p1892_p9, %p48_p1  ;;  %s299_s14 = sshll.u32 %s2324_s29, 4  ;;  %s300_s14 = int_to_ptr.vmem [resolvable:$true] %s299_s14 }
  0x16   : > { %s263_s19 = sshll.u32 %s2736_s1, 4  ;;  %s314_s24 = sshll.u32 %s2726_s7, 4  ;;  %s264_s19 = int_to_ptr.hbm [resolvable:$true] %s263_s19  ;;  %s315_s24 = int_to_ptr.hbm [resolvable:$true] %s314_s24 }
  0x17   : > { %1895 = dma.hbm_to_vmem [thread:$0]  (!%p2430_p10), %s264_s19, 1024, %s266_s22, [#allocation6], %s2729_s27, %s2729_s27, %s2730_s28  }
  0x18   : > { %s297_s26 = sshll.u32 %s2739_s5, 4  ;;  %s2325_s25 = smov [#allocation7]   ;;  %s298_s26 = int_to_ptr.hbm [resolvable:$true] %s297_s26 }
  0x19   : > { %1901 = dma.hbm_to_vmem [thread:$0]  (!%p2430_p10), %s298_s26, 1024, %s300_s14, [#allocation9], %s2729_s27, %s2729_s27, %s2730_s28  }
  0x1a   : > { %s280_s21 = sshll.u32 %s2740_s3, 4  ;;  %s282_s29 = sshll.u32 %s2325_s25, 4  ;;  %s281_s21 = int_to_ptr.hbm [resolvable:$true] %s280_s21  ;;  %s283_s29 = int_to_ptr.vmem [resolvable:$true] %s282_s29 }
  0x1b   : > { %1898 = dma.hbm_to_vmem [thread:$0]  (!%p2430_p10), %s281_s21, 1024, %s283_s29, [#allocation6], %s2729_s27, %s2729_s27, %s2730_s28  }
  0x1c   : > { %s2326_s17 = smov [#allocation10]   ;;  %s2465_s14 = sadd.s32 1, %s2319_s12  }
  0x1d   : > { %s316_s26 = sshll.u32 %s2326_s17, 4  ;;  %s34_s18 = sadd.s32 1, %s2315_s11  ;;  %s317_s26 = int_to_ptr.vmem [resolvable:$true] %s316_s26 }
  0x1e   : > { %1904 = dma.hbm_to_vmem [thread:$0]  (!%p2430_p10), %s315_s24, 1024, %s317_s26, [#allocation9], %s2729_s27, %s2729_s27, %s2730_s28  }
  0x1f   : > { %s31_s19 = ssub.s32 %s2319_s12, %s2465_s14  ;;  %p41_p12 = scmp.ne.s32.totalorder %s2315_s11, %s2311_s10 }
  0x20   : > { %p32_p13 = scmp.eq.s32.totalorder %s31_s19, 0  ;;  %p42_p0 = scmp.eq.s32.totalorder %s2319_s12, 0 }
  0x21   : > { %p2475_p3 = por %p239_p2, %p41_p12  ;;  %p1917_p5 = scmp.lt.s32.totalorder %s2319_s12, 2 }
  0x22   : > { %s2481_s22 = scalar_select %p32_p13, %s2315_s11, %s34_s18  }
  0x23   : > { %p43_p7 = por %p42_p0, %p41_p12  ;;  %s333_s23 = sand.u32 1, %s2315_s11  }
  0x24   : > { %s1639_s25 = sshll.u32 %s333_s23, 6  ;;  %s1830_s24 = sshll.u32 %s2319_s12, 6 }
  0x25   : > { %s342_s26 = scalar_lea.hbm %s2719_s0, %s1830_s24  ;;  %s337_s27 = scalar_lea.vmem [#allocation2], %s1639_s25 }
  0x26   : > { %s345_s28 = sshll.u32 %s337_s27, 4  ;;  %s343_s19 = sshll.u32 %s342_s26, 4  ;;  %s346_s28 = int_to_ptr.vmem [resolvable:$true] %s345_s28  ;;  %s344_s19 = int_to_ptr.hbm [resolvable:$true] %s343_s19 }
  0x27   : > { %p2488_p2 = pnand %p1917_p5, %p43_p7  ;;  %s334_s18 = scalar_lea.sflag [#allocation3], %s333_s23 }
  0x28   : > { %s2215_s3 = sshra.s32 %s344_s19, 4  ;;  %s2222_s27 = scalar_lea.hbm %s2719_s0, 128  ;;  %s2216_s3 = int_to_ptr.hbm [resolvable:$true] %s2215_s3 }
  0x29   : > { %s2217_s5 = scalar_lea.hbm %s2216_s3, 64  ;;  %p2219_p10 = pneg %p2488_p2 }
  0x2a   : > { %p2218_p9 = scmp.ne.s32.totalorder %s2216_s3, %s2217_s5  ;;  %p2223_p0 = scmp.lt.s32.totalorder %s2216_s3, %s2719_s0 }
  0x2b   : > { %p2224_p5 = scmp.lt.s32.totalorder %s2222_s27, %s2217_s5 }
  0x2c   : > { %p2220_p12 = pnand %p2219_p10, %p2218_p9 }
  0x2d   : > { %p2225_p7 = por %p2224_p5, %p2223_p0 }
  0x2e   : > { %p2221_p13 = pneg %p2220_p12 }
  0x30   : > { %p2226_p11 = pnand %p2225_p7, %p2221_p13 }
  0x32   : > { %2229 = shalt.err (!%p2226_p11)
}
  0x33   : > { %s2743_s23 = smov 4   ;;  %s2744_s26 = smov 64  }
  0x34   : > { %1908 = dma.hbm_to_vmem [thread:$0]  (!%p2488_p2), %s344_s19, 1024, %s346_s28, %s334_s18, %s2744_s26, %s2744_s26, %s2743_s23  }
  0x35   : > { %357 = sbr.rel (%p2422_p8) target bundleno = 823 (0x337), region = 56  ;;  %s2508_s24 = sand.u32 (!%p2422_p8), 1, %s2311_s10  }
  0x36   : > { %s1643_s3 = sshll.u32 (!%p2422_p8), %s2508_s24, 6  ;;  %s360_s5 = scalar_lea.sflag (!%p2422_p8), [#allocation3], %s2508_s24 }
  0x37   : > { %s2512_s25 = scalar_lea.vmem (!%p2422_p8), [#allocation2], %s1643_s3 }
  0x3a   : > { %2290 = dma.done.wait (%p2409_p4), %s360_s5, 1024  }
  0x3b   : > { %2292 = vsyncadd (%p2409_p4), %s360_s5, 4294966272 }
  0x3c   : > { %2294 = dma.done.wait (%p48_p1), [#allocation6], 2048  }
  0x3d   : > { %2296 = vsyncadd (%p48_p1), [#allocation6], 4294965248 }
  0x3e   : > { %2298 = dma.done.wait (%p48_p1), [#allocation9], 2048  }
  0x3f   : > { %2300 = vsyncadd (%p48_p1), [#allocation9], 4294965248  ;;  %v1846_v0 = vld [vmem:[#allocation5 + $0x38] sm:$0xff]  ;;  %v1845_v1 = vld [vmem:[#allocation5 + $0x30] sm:$0xff]  ;;  %s1648_s17 = sshll.u32 %s2508_s24, 7  ;;  %s1871_s26 = sshll.u32 %s2400_s13, 7 }
  0x40   : > { %553 = vmatpush.bf16.msra.mxu0 %v1846_v0  ;;  %v1844_v2 = vld [vmem:[#allocation5 + $0x28] sm:$0xff]  ;;  %v1843_v3 = vld [vmem:[#allocation5 + $0x20] sm:$0xff]  ;;  %v1842_v4 = vld [vmem:[#allocation5 + $0x18] sm:$0xff]  ;;  %s2654_s23 = scalar_lea.vmem [#allocation11], %s1648_s17  ;;  %s1506_s13 = scalar_lea.sflag [#allocation4], %s2508_s24 }
  0x41   : > { %v1841_v5 = vld [vmem:[#allocation5 + $0x10] sm:$0xff]  ;;  %v1840_v6 = vld [vmem:[#allocation5 + $0x8] sm:$0xff]  ;;  %v1839_v7 = vld [vmem:[#allocation5] sm:$0xff]  ;;  %s1518_s1 = sshll.u32 %s2654_s23, 4  ;;  %s2265_s27 = scalar_lea.hbm %s2728_s9, 256  ;;  %s1519_s1 = int_to_ptr.vmem [resolvable:$true] %s1518_s1 }
  0x42   : > { %v1831_v8 = vld [vmem:[%s2512_s25] sm:$0xff]  ;;  %v1832_v9 = vld [vmem:[%s2512_s25 + $0x8] sm:$0xff]  ;;  %v1833_v10 = vld [vmem:[%s2512_s25 + $0x10] sm:$0xff] }
  0x43   : > { %v1834_v11 = vld [vmem:[%s2512_s25 + $0x18] sm:$0xff]  ;;  %v1835_v12 = vld [vmem:[%s2512_s25 + $0x20] sm:$0xff]  ;;  %v1853_v14 = vld [vmem:[#allocation7 + $0x30] sm:$0xff] }
  0x44   : > { %554 = vmatpush.bf16.msra.mxu0 %v1845_v1  ;;  %v1854_v13 = vld [vmem:[#allocation7 + $0x38] sm:$0xff]  ;;  %v1836_v15 = vld [vmem:[%s2512_s25 + $0x28] sm:$0xff]  ;;  %v1851_v17 = vld [vmem:[#allocation7 + $0x20] sm:$0xff] }
  0x45   : > { %678 = vmatpush.bf16.msra.mxu1 %v1854_v13  ;;  %v1852_v16 = vld [vmem:[#allocation7 + $0x28] sm:$0xff]  ;;  %v1850_v18 = vld [vmem:[#allocation7 + $0x18] sm:$0xff]  ;;  %v1837_v19 = vld [vmem:[%s2512_s25 + $0x30] sm:$0xff] }
  0x46   : > { %v1849_v20 = vld [vmem:[#allocation7 + $0x10] sm:$0xff]  ;;  %v1848_v21 = vld [vmem:[#allocation7 + $0x8] sm:$0xff]  ;;  %v1847_v22 = vld [vmem:[#allocation7] sm:$0xff] }
  0x47   : > { %v1838_v23 = vld [vmem:[%s2512_s25 + $0x38] sm:$0xff]  ;;  %v1963_v25 = vld [vmem:[%s2721_s2] ss:$0 sm:$0xff]  ;;  %v1861_v55 = vld [vmem:[#allocation8 + $0x30] sm:$0xff]  ;;  %s1517_s25 = scalar_lea.hbm %s2728_s9, %s1871_s26 }
  0x48   : > { %555 = vmatpush.bf16.msra.mxu0 %v1844_v2  ;;  %v1862_v51 = vld [vmem:[#allocation8 + $0x38] sm:$0xff]  ;;  %v1860_v57 = vld [vmem:[#allocation8 + $0x28] sm:$0xff]  ;;  %v1859_v59 = vld [vmem:[#allocation8 + $0x20] sm:$0xff]  ;;  %s1520_s15 = sshll.u32 %s1517_s25, 4  ;;  %s1521_s15 = int_to_ptr.hbm [resolvable:$true] %s1520_s15 }
  0x49   : > { %679 = vmatpush.bf16.msra.mxu1 %v1853_v14  ;;  %803 = vmatpush.bf16.msra.mxu2 %v1862_v51  ;;  %v1858_v60 = vld [vmem:[#allocation8 + $0x18] sm:$0xff]  ;;  %v1857_v0 = vld [vmem:[#allocation8 + $0x10] sm:$0xff]  ;;  %v1856_v2 = vld [vmem:[#allocation8 + $0x8] sm:$0xff]  ;;  %s2259_s20 = sshra.s32 %s1521_s15, 4  ;;  %s2260_s20 = int_to_ptr.hbm [resolvable:$true] %s2259_s20 }
  0x4a   : > { %v1869_v51 = vld [vmem:[#allocation10 + $0x30] sm:$0xff]  ;;  %s2261_s28 = scalar_lea.hbm %s2260_s20, 128  ;;  %p2266_p11 = scmp.lt.s32.totalorder %s2260_s20, %s2728_s9 }
  0x4b   : > { %p2262_p1 = scmp.ne.s32.totalorder %s2260_s20, %s2261_s28  ;;  %p2267_p2 = scmp.lt.s32.totalorder %s2265_s27, %s2261_s28 }
  0x4c   : > { %556 = vmatpush.bf16.msra.mxu0 %v1843_v3 }
  0x4d   : > { %680 = vmatpush.bf16.msra.mxu1 %v1852_v16  ;;  %804 = vmatpush.bf16.msra.mxu2 %v1861_v55  ;;  %v1865_v55 = vld [vmem:[#allocation10 + $0x10] sm:$0xff]  ;;  %p2263_p4 = pnand %p2262_p1, %p2475_p3  ;;  %p2268_p9 = por %p2267_p2, %p2266_p11 }
  0x4f   : > { %p2264_p8 = pneg %p2263_p4 }
  0x50   : > { %557 = vmatpush.bf16.msra.mxu0 %v1842_v4  ;;  %v1855_v4 = vld [vmem:[#allocation8] sm:$0xff] }
  0x51   : > { %681 = vmatpush.bf16.msra.mxu1 %v1851_v17  ;;  %805 = vmatpush.bf16.msra.mxu2 %v1860_v57  ;;  %p2269_p10 = pnand %p2268_p9, %p2264_p8 }
  0x54   : > { %558 = vmatpush.bf16.msra.mxu0 %v1841_v5 }
  0x55   : > { %682 = vmatpush.bf16.msra.mxu1 %v1850_v18  ;;  %806 = vmatpush.bf16.msra.mxu2 %v1859_v59 }
  0x58   : > { %559 = vmatpush.bf16.msra.mxu0 %v1840_v6 }
  0x59   : > { %683 = vmatpush.bf16.msra.mxu1 %v1849_v20  ;;  %807 = vmatpush.bf16.msra.mxu2 %v1858_v60 }
  0x5c   : > { %560 = vmatpush.bf16.msra.mxu0 %v1839_v7 }
  0x5d   : > { %684 = vmatpush.bf16.msra.mxu1 %v1848_v21  ;;  %808 = vmatpush.bf16.msra.mxu2 %v1857_v0 }
  0x5f   : > { %561 = vmatmul.bf16.vlgmr.msra.gmra.mxu0 %v1831_v8 }
  0x61   : > { %685 = vmatpush.bf16.msra.mxu1 %v1847_v22  ;;  %809 = vmatpush.bf16.msra.mxu2 %v1856_v2 }
  0x65   : > { %810 = vmatpush.bf16.msra.mxu2 %v1855_v4 }
  0x6f   : > { %566 = vmatmul.bf16.gmra.mxu0 %v1832_v9 }
  0x7f   : > { %571 = vmatmul.bf16.gmra.mxu0 %v1833_v10  ;;  %v1964_v10 = vld [vmem:[%s2723_s4] ss:$0 sm:$0xff] }
  0x8f   : > { %576 = vmatmul.bf16.gmra.mxu0 %v1834_v11 }
  0x9f   : > { %581 = vmatmul.bf16.gmra.mxu0 %v1835_v12 }
  0xaf   : > { %586 = vmatmul.bf16.gmra.mxu0 %v1836_v15 }
  0xbf   : > { %591 = vmatmul.bf16.gmra.mxu0 %v1837_v19 }
  0xcf   : > { %596 = vmatmul.bf16.gmra.mxu0 %v1838_v23 }
  0xdc   : > { %v562_v24 = vpop.f32.mrf.mxu0 }
  0xdd   : > { %v563_v27 = vadd.f32 %v1963_v25, %v562_v24 }
  0xe4   : > { %v564_v26 = vpop.f32.mrf.mxu0 }
  0xe5   : > { %v565_v28 = vadd.f32 %v1963_v25, %v564_v26 }
  0xe7   : > { %v619_v29 = vpack.c.bf16 %v565_v28, %v563_v27 }
  0xe9   : > { %686 = vmatmul.bf16.vlgmr.msra.gmra.mxu1 %v619_v29 }
  0xec   : > { %v567_v30 = vpop.f32.mrf.mxu0 }
  0xed   : > { %v568_v32 = vadd.f32 %v1963_v25, %v567_v30 }
  0xf4   : > { %v569_v31 = vpop.f32.mrf.mxu0 }
  0xf5   : > { %v570_v33 = vadd.f32 %v1963_v25, %v569_v31 }
  0xf7   : > { %v620_v34 = vpack.c.bf16 %v570_v33, %v568_v32 }
  0xf9   : > { %691 = vmatmul.bf16.gmra.mxu1 %v620_v34 }
  0xfc   : > { %v572_v35 = vpop.f32.mrf.mxu0 }
  0xfd   : > { %v573_v37 = vadd.f32 %v1963_v25, %v572_v35 }
 0x104   : > { %v574_v36 = vpop.f32.mrf.mxu0 }
 0x105   : > { %v575_v38 = vadd.f32 %v1963_v25, %v574_v36 }
 0x107   : > { %v621_v39 = vpack.c.bf16 %v575_v38, %v573_v37 }
 0x109   : > { %696 = vmatmul.bf16.gmra.mxu1 %v621_v39 }
 0x10c   : > { %v577_v40 = vpop.f32.mrf.mxu0 }
 0x10d   : > { %v578_v42 = vadd.f32 %v1963_v25, %v577_v40 }
 0x114   : > { %v579_v41 = vpop.f32.mrf.mxu0 }
 0x115   : > { %v580_v43 = vadd.f32 %v1963_v25, %v579_v41 }
 0x117   : > { %v622_v44 = vpack.c.bf16 %v580_v43, %v578_v42 }
 0x119   : > { %701 = vmatmul.bf16.gmra.mxu1 %v622_v44 }
 0x11c   : > { %v582_v45 = vpop.f32.mrf.mxu0 }
 0x11d   : > { %v583_v47 = vadd.f32 %v1963_v25, %v582_v45 }
 0x124   : > { %v584_v46 = vpop.f32.mrf.mxu0 }
 0x125   : > { %v585_v48 = vadd.f32 %v1963_v25, %v584_v46 }
 0x127   : > { %v623_v49 = vpack.c.bf16 %v585_v48, %v583_v47  ;;  %v1870_v47 = vld [vmem:[#allocation10 + $0x38] sm:$0xff] }
 0x128   : > { %1232 = vmatpush.bf16.msra.mxu3 %v1870_v47 }
 0x129   : > { %706 = vmatmul.bf16.gmra.mxu1 %v623_v49 }
 0x12c   : > { %v587_v50 = vpop.f32.mrf.mxu0  ;;  %1233 = vmatpush.bf16.msra.mxu3 %v1869_v51 }
 0x12d   : > { %v588_v53 = vadd.f32 %v1963_v25, %v587_v50 }
 0x134   : > { %v589_v52 = vpop.f32.mrf.mxu0 }
 0x135   : > { %v590_v54 = vadd.f32 %v1963_v25, %v589_v52  ;;  %v1868_v52 = vld [vmem:[#allocation10 + $0x28] sm:$0xff] }
 0x136   : > { %1234 = vmatpush.bf16.msra.mxu3 %v1868_v52 }
 0x137   : > { %v624_v56 = vpack.c.bf16 %v590_v54, %v588_v53  ;;  %v1867_v53 = vld [vmem:[#allocation10 + $0x20] sm:$0xff]  ;;  %v1866_v54 = vld [vmem:[#allocation10 + $0x18] sm:$0xff] }
 0x139   : > { %711 = vmatmul.bf16.gmra.mxu1 %v624_v56  ;;  %v2543_v56 = vld [vmem:[%s2725_s6] ss:$0 sm:$0xff] }
 0x13a   : > { %1235 = vmatpush.bf16.msra.mxu3 %v1867_v53 }
 0x13c   : > { %v592_v58 = vpop.f32.mrf.mxu0 }
 0x13d   : > { %v593_v62 = vadd.f32 %v1963_v25, %v592_v58  ;;  %v1864_v58 = vld [vmem:[#allocation10 + $0x8] sm:$0xff] }
 0x13e   : > { %1236 = vmatpush.bf16.msra.mxu3 %v1866_v54 }
 0x142   : > { %1237 = vmatpush.bf16.msra.mxu3 %v1865_v55 }
 0x144   : > { %v594_v61 = vpop.f32.mrf.mxu0 }
 0x145   : > { %v595_v63 = vadd.f32 %v1963_v25, %v594_v61  ;;  %v1863_v61 = vld [vmem:[#allocation10] sm:$0xff] }
 0x146   : > { %1238 = vmatpush.bf16.msra.mxu3 %v1864_v58 }
 0x147   : > { %v625_v1 = vpack.c.bf16 %v595_v63, %v593_v62 }
 0x149   : > { %716 = vmatmul.bf16.gmra.mxu1 %v625_v1 }
 0x14a   : > { %1239 = vmatpush.bf16.msra.mxu3 %v1863_v61 }
 0x14c   : > { %v597_v3 = vpop.f32.mrf.mxu0 }
 0x14d   : > { %v598_v6 = vadd.f32 %v1963_v25, %v597_v3 }
 0x154   : > { %v599_v5 = vpop.f32.mrf.mxu0 }
 0x155   : > { %v600_v7 = vadd.f32 %v1963_v25, %v599_v5 }
 0x157   : > { %v626_v8 = vpack.c.bf16 %v600_v7, %v598_v6 }
 0x159   : > { %721 = vmatmul.bf16.gmra.mxu1 %v626_v8 }
 0x166   : > { %v687_v9 = vpop.f32.mrf.mxu1 }
 0x167   : > { %v688_v12 = vadd.f32 %v1964_v10, %v687_v9 }
 0x16e   : > { %v689_v11 = vpop.f32.mrf.mxu1 }
 0x16f   : > { %v690_v13 = vadd.f32 %v1964_v10, %v689_v11 }
 0x171   : > { %v744_v14 = vpack.c.bf16 %v690_v13, %v688_v12 }
 0x173   : > { %811 = vmatmul.bf16.vlgmr.msra.gmra.mxu2 %v744_v14 }
 0x176   : > { %v692_v15 = vpop.f32.mrf.mxu1 }
 0x177   : > { %v693_v17 = vadd.f32 %v1964_v10, %v692_v15 }
 0x17e   : > { %v694_v16 = vpop.f32.mrf.mxu1 }
 0x17f   : > { %v695_v18 = vadd.f32 %v1964_v10, %v694_v16 }
 0x181   : > { %v745_v19 = vpack.c.bf16 %v695_v18, %v693_v17 }
 0x183   : > { %816 = vmatmul.bf16.gmra.mxu2 %v745_v19 }
 0x186   : > { %v697_v20 = vpop.f32.mrf.mxu1 }
 0x187   : > { %v698_v22 = vadd.f32 %v1964_v10, %v697_v20 }
 0x18e   : > { %v699_v21 = vpop.f32.mrf.mxu1 }
 0x18f   : > { %v700_v23 = vadd.f32 %v1964_v10, %v699_v21 }
 0x191   : > { %v746_v24 = vpack.c.bf16 %v700_v23, %v698_v22 }
 0x193   : > { %821 = vmatmul.bf16.gmra.mxu2 %v746_v24 }
 0x196   : > { %v702_v25 = vpop.f32.mrf.mxu1 }
 0x197   : > { %v703_v27 = vadd.f32 %v1964_v10, %v702_v25 }
 0x19e   : > { %v704_v26 = vpop.f32.mrf.mxu1 }
 0x19f   : > { %v705_v28 = vadd.f32 %v1964_v10, %v704_v26 }
 0x1a1   : > { %v747_v29 = vpack.c.bf16 %v705_v28, %v703_v27 }
 0x1a3   : > { %826 = vmatmul.bf16.gmra.mxu2 %v747_v29 }
 0x1a6   : > { %v707_v30 = vpop.f32.mrf.mxu1 }
 0x1a7   : > { %v708_v32 = vadd.f32 %v1964_v10, %v707_v30 }
 0x1ae   : > { %v709_v31 = vpop.f32.mrf.mxu1 }
 0x1af   : > { %v710_v33 = vadd.f32 %v1964_v10, %v709_v31 }
 0x1b1   : > { %v748_v34 = vpack.c.bf16 %v710_v33, %v708_v32 }
 0x1b3   : > { %831 = vmatmul.bf16.gmra.mxu2 %v748_v34 }
 0x1b6   : > { %v712_v35 = vpop.f32.mrf.mxu1 }
 0x1b7   : > { %v713_v37 = vadd.f32 %v1964_v10, %v712_v35 }
 0x1be   : > { %v714_v36 = vpop.f32.mrf.mxu1 }
 0x1bf   : > { %v715_v38 = vadd.f32 %v1964_v10, %v714_v36 }
 0x1c1   : > { %v749_v39 = vpack.c.bf16 %v715_v38, %v713_v37 }
 0x1c3   : > { %836 = vmatmul.bf16.gmra.mxu2 %v749_v39 }
 0x1c6   : > { %v717_v40 = vpop.f32.mrf.mxu1 }
 0x1c7   : > { %v718_v42 = vadd.f32 %v1964_v10, %v717_v40 }
 0x1ce   : > { %v719_v41 = vpop.f32.mrf.mxu1 }
 0x1cf   : > { %v720_v43 = vadd.f32 %v1964_v10, %v719_v41 }
 0x1d1   : > { %v750_v44 = vpack.c.bf16 %v720_v43, %v718_v42 }
 0x1d3   : > { %841 = vmatmul.bf16.gmra.mxu2 %v750_v44 }
 0x1d6   : > { %v722_v45 = vpop.f32.mrf.mxu1 }
 0x1d7   : > { %v723_v48 = vadd.f32 %v1964_v10, %v722_v45 }
 0x1de   : > { %v724_v46 = vpop.f32.mrf.mxu1 }
 0x1df   : > { %v725_v49 = vadd.f32 %v1964_v10, %v724_v46 }
 0x1e1   : > { %v751_v50 = vpack.c.bf16 %v725_v49, %v723_v48 }
 0x1e3   : > { %846 = vmatmul.bf16.gmra.mxu2 %v751_v50 }
 0x1f6   : > { %v812_v57 = vpop.f32.mrf.mxu2 }
 0x1f7   : > { %v813_v59 = vadd.f32 %v2543_v56, %v812_v57 }
 0x1f9   : > { %v1777_v60 = vmul.f32 -1.442695, %v813_v59 }
 0x1fb   : > { %1967 = vpow2.f32 %v1777_v60 }
 0x1fe   : > { %v814_v62 = vpop.f32.mrf.mxu2 }
 0x1ff   : > { %v815_v63 = vadd.f32 %v2543_v56, %v814_v62 }
 0x201   : > { %v1968_v0 = vpop.eup %1967  ;;  %v1778_v1 = vmul.f32 -1.442695, %v815_v63 }
 0x202   : > { %v900_v2 = vadd.f32 1.0, %v1968_v0 }
 0x203   : > { %1969 = vpow2.f32 %v1778_v1 }
 0x204   : > { %1971 = vrcp.f32 %v900_v2  ;;  %vm921_vm1 = vweird.f32 %v900_v2  ;;  %v925_v22 = vand.u32 2147483647, %v900_v2  ;;  %v927_v23 = vand.u32 2147483648, %v900_v2 }
 0x206   : > { %v817_v3 = vpop.f32.mrf.mxu2  ;;  %vm926_vm5 = vcmp.eq.f32.partialorder %v925_v22, 8.507059e+37  ;;  %v928_v35 = vor.u32 1.1754944e-38, %v927_v23 }
 0x207   : > { %v818_v4 = vadd.f32 %v2543_v56, %v817_v3 }
 0x209   : > { %v1970_v5 = vpop.eup %1969  ;;  %v1779_v6 = vmul.f32 -1.442695, %v818_v4 }
 0x20a   : > { %v1972_v7 = vpop.eup %1971  ;;  %v901_v8 = vadd.f32 1.0, %v1970_v5 }
 0x20b   : > { %1973 = vpow2.f32 %v1779_v6  ;;  %v917_v9 = vmul.f32 %v1972_v7, %v900_v2  ;;  %vm922_vm0 = vweird.f32 %v1972_v7 }
 0x20c   : > { %1975 = vrcp.f32 %v901_v8  ;;  %v942_v24 = vand.u32 2147483648, %v901_v8  ;;  %v940_v27 = vand.u32 2147483647, %v901_v8  ;;  %vm2553_vm3 = vmor %vm921_vm1, %vm922_vm0  ;;  %vm936_vm4 = vweird.f32 %v901_v8 }
 0x20d   : > { %v918_v10 = vsub.f32 1.0, %v917_v9 }
 0x20e   : > { %v819_v11 = vpop.f32.mrf.mxu2  ;;  %v943_v36 = vor.u32 1.1754944e-38, %v942_v24  ;;  %vm941_vm7 = vcmp.eq.f32.partialorder %v940_v27, 8.507059e+37 }
 0x20f   : > { %v820_v12 = vadd.f32 %v2543_v56, %v819_v11  ;;  %v919_v15 = vmul.f32 %v1972_v7, %v918_v10 }
 0x211   : > { %v1974_v13 = vpop.eup %1973  ;;  %v1780_v14 = vmul.f32 -1.442695, %v820_v12  ;;  %v920_v19 = vadd.f32 %v1972_v7, %v919_v15 }
 0x212   : > { %v1976_v16 = vpop.eup %1975  ;;  %v2549_v17 = vadd.f32 1.0, %v1974_v13 }
 0x213   : > { %1977 = vpow2.f32 %v1780_v14  ;;  %v932_v18 = vmul.f32 %v1976_v16, %v901_v8  ;;  %vm937_vm2 = vweird.f32 %v1976_v16  ;;  %v924_v31 = vsel %vm2553_vm3, %v1972_v7, %v920_v19 }
 0x214   : > { %1979 = vrcp.f32 %v2549_v17  ;;  %vm938_vm6 = vmor %vm936_vm4, %vm937_vm2  ;;  %v929_v39 = vsel %vm926_vm5, %v928_v35, %v924_v31  ;;  %vm951_vm9 = vweird.f32 %v2549_v17  ;;  %v955_v54 = vand.u32 2147483647, %v2549_v17 }
 0x215   : > { %v933_v20 = vsub.f32 1.0, %v932_v18  ;;  %v957_v55 = vand.u32 2147483648, %v2549_v17 }
 0x216   : > { %v822_v21 = vpop.f32.mrf.mxu2  ;;  %vm956_vm13 = vcmp.eq.f32.partialorder %v955_v54, 8.507059e+37 }
 0x217   : > { %v823_v25 = vadd.f32 %v2543_v56, %v822_v21  ;;  %v934_v26 = vmul.f32 %v1976_v16, %v933_v20  ;;  %v958_v4 = vor.u32 1.1754944e-38, %v957_v55 }
 0x219   : > { %v1978_v29 = vpop.eup %1977  ;;  %v1781_v30 = vmul.f32 -1.442695, %v823_v25  ;;  %v935_v32 = vadd.f32 %v1976_v16, %v934_v26 }
 0x21a   : > { %v1980_v33 = vpop.eup %1979  ;;  %v903_v34 = vadd.f32 1.0, %v1978_v29 }
 0x21b   : > { %1981 = vpow2.f32 %v1781_v30  ;;  %v939_v37 = vsel %vm938_vm6, %v1976_v16, %v935_v32  ;;  %v947_v38 = vmul.f32 %v1980_v33, %v2549_v17  ;;  %vm952_vm8 = vweird.f32 %v1980_v33 }
 0x21c   : > { %1983 = vrcp.f32 %v903_v34  ;;  %v944_v40 = vsel %vm941_vm7, %v943_v36, %v939_v37  ;;  %v972_v57 = vand.u32 2147483648, %v903_v34  ;;  %v970_v60 = vand.u32 2147483647, %v903_v34  ;;  %vm2568_vm11 = vmor %vm951_vm9, %vm952_vm8 }
 0x21d   : > { %v1173_v41 = vpack.c.bf16 %v944_v40, %v929_v39  ;;  %v948_v42 = vsub.f32 1.0, %v947_v38  ;;  %vm966_vm12 = vweird.f32 %v903_v34 }
 0x21e   : > { %v824_v43 = vpop.f32.mrf.mxu2  ;;  %v973_v5 = vor.u32 1.1754944e-38, %v972_v57  ;;  %vm971_vm15 = vcmp.eq.f32.partialorder %v970_v60, 8.507059e+37 }
 0x21f   : > { %v825_v44 = vadd.f32 %v2543_v56, %v824_v43  ;;  %1240 = vmatmul.bf16.vlgmr.msra.gmra.mxu3 %v1173_v41  ;;  %v949_v47 = vmul.f32 %v1980_v33, %v948_v42 }
 0x221   : > { %v1982_v45 = vpop.eup %1981  ;;  %v1782_v46 = vmul.f32 -1.442695, %v825_v44  ;;  %v950_v51 = vadd.f32 %v1980_v33, %v949_v47 }
 0x222   : > { %v1984_v48 = vpop.eup %1983  ;;  %v2561_v49 = vadd.f32 1.0, %v1982_v45 }
 0x223   : > { %1985 = vpow2.f32 %v1782_v46  ;;  %v962_v50 = vmul.f32 %v1984_v48, %v903_v34  ;;  %vm967_vm10 = vweird.f32 %v1984_v48  ;;  %v954_v0 = vsel %vm2568_vm11, %v1980_v33, %v950_v51 }
 0x224   : > { %1987 = vrcp.f32 %v2561_v49  ;;  %vm968_vm14 = vmor %vm966_vm12, %vm967_vm10  ;;  %v959_v8 = vsel %vm956_vm13, %v958_v4, %v954_v0  ;;  %vm981_vm1 = vweird.f32 %v2561_v49  ;;  %v985_v23 = vand.u32 2147483647, %v2561_v49 }
 0x225   : > { %v963_v52 = vsub.f32 1.0, %v962_v50  ;;  %v987_v24 = vand.u32 2147483648, %v2561_v49 }
 0x226   : > { %v827_v53 = vpop.f32.mrf.mxu2  ;;  %vm986_vm5 = vcmp.eq.f32.partialorder %v985_v23, 8.507059e+37 }
 0x227   : > { %v828_v58 = vadd.f32 %v2543_v56, %v827_v53  ;;  %v964_v59 = vmul.f32 %v1984_v48, %v963_v52  ;;  %v988_v36 = vor.u32 1.1754944e-38, %v987_v24 }
 0x229   : > { %v1986_v62 = vpop.eup %1985  ;;  %v1783_v63 = vmul.f32 -1.442695, %v828_v58  ;;  %v965_v1 = vadd.f32 %v1984_v48, %v964_v59 }
 0x22a   : > { %v1988_v2 = vpop.eup %1987  ;;  %v905_v3 = vadd.f32 1.0, %v1986_v62 }
 0x22b   : > { %1989 = vpow2.f32 %v1783_v63  ;;  %v969_v6 = vsel %vm968_vm14, %v1984_v48, %v965_v1  ;;  %v977_v7 = vmul.f32 %v1988_v2, %v2561_v49  ;;  %vm982_vm0 = vweird.f32 %v1988_v2 }
 0x22c   : > { %1991 = vrcp.f32 %v905_v3  ;;  %v974_v9 = vsel %vm971_vm15, %v973_v5, %v969_v6  ;;  %v1002_v25 = vand.u32 2147483648, %v905_v3  ;;  %v1000_v28 = vand.u32 2147483647, %v905_v3  ;;  %vm2583_vm3 = vmor %vm981_vm1, %vm982_vm0 }
 0x22d   : > { %v1174_v10 = vpack.c.bf16 %v974_v9, %v959_v8  ;;  %v978_v11 = vsub.f32 1.0, %v977_v7  ;;  %vm996_vm4 = vweird.f32 %v905_v3 }
 0x22e   : > { %v829_v12 = vpop.f32.mrf.mxu2  ;;  %v1003_v37 = vor.u32 1.1754944e-38, %v1002_v25  ;;  %vm1001_vm7 = vcmp.eq.f32.partialorder %v1000_v28, 8.507059e+37 }
 0x22f   : > { %v830_v13 = vadd.f32 %v2543_v56, %v829_v12  ;;  %1245 = vmatmul.bf16.gmra.mxu3 %v1174_v10  ;;  %v979_v16 = vmul.f32 %v1988_v2, %v978_v11 }
 0x231   : > { %v1990_v14 = vpop.eup %1989  ;;  %v1784_v15 = vmul.f32 -1.442695, %v830_v13  ;;  %v980_v20 = vadd.f32 %v1988_v2, %v979_v16 }
 0x232   : > { %v1992_v17 = vpop.eup %1991  ;;  %v2576_v18 = vadd.f32 1.0, %v1990_v14 }
 0x233   : > { %1993 = vpow2.f32 %v1784_v15  ;;  %v992_v19 = vmul.f32 %v1992_v17, %v905_v3  ;;  %vm997_vm2 = vweird.f32 %v1992_v17  ;;  %v984_v32 = vsel %vm2583_vm3, %v1988_v2, %v980_v20 }
 0x234   : > { %1995 = vrcp.f32 %v2576_v18  ;;  %vm998_vm6 = vmor %vm996_vm4, %vm997_vm2  ;;  %v989_v40 = vsel %vm986_vm5, %v988_v36, %v984_v32  ;;  %vm1011_vm9 = vweird.f32 %v2576_v18  ;;  %v1015_v55 = vand.u32 2147483647, %v2576_v18 }
 0x235   : > { %v993_v21 = vsub.f32 1.0, %v992_v19  ;;  %v1017_v57 = vand.u32 2147483648, %v2576_v18 }
 0x236   : > { %v832_v22 = vpop.f32.mrf.mxu2  ;;  %vm1016_vm13 = vcmp.eq.f32.partialorder %v1015_v55, 8.507059e+37 }
 0x237   : > { %v833_v26 = vadd.f32 %v2543_v56, %v832_v22  ;;  %v994_v27 = vmul.f32 %v1992_v17, %v993_v21  ;;  %v1018_v5 = vor.u32 1.1754944e-38, %v1017_v57 }
 0x239   : > { %v1994_v30 = vpop.eup %1993  ;;  %v1785_v31 = vmul.f32 -1.442695, %v833_v26  ;;  %v995_v33 = vadd.f32 %v1992_v17, %v994_v27 }
 0x23a   : > { %v1996_v34 = vpop.eup %1995  ;;  %v907_v35 = vadd.f32 1.0, %v1994_v30 }
 0x23b   : > { %1997 = vpow2.f32 %v1785_v31  ;;  %v999_v38 = vsel %vm998_vm6, %v1992_v17, %v995_v33  ;;  %v1007_v39 = vmul.f32 %v1996_v34, %v2576_v18  ;;  %vm1012_vm8 = vweird.f32 %v1996_v34 }
 0x23c   : > { %1999 = vrcp.f32 %v907_v35  ;;  %v1004_v41 = vsel %vm1001_vm7, %v1003_v37, %v999_v38  ;;  %v1032_v58 = vand.u32 2147483648, %v907_v35  ;;  %v1030_v61 = vand.u32 2147483647, %v907_v35  ;;  %vm2598_vm11 = vmor %vm1011_vm9, %vm1012_vm8 }
 0x23d   : > { %v1175_v42 = vpack.c.bf16 %v1004_v41, %v989_v40  ;;  %v1008_v43 = vsub.f32 1.0, %v1007_v39  ;;  %vm1026_vm12 = vweird.f32 %v907_v35 }
 0x23e   : > { %v834_v44 = vpop.f32.mrf.mxu2  ;;  %v1033_v6 = vor.u32 1.1754944e-38, %v1032_v58  ;;  %vm1031_vm15 = vcmp.eq.f32.partialorder %v1030_v61, 8.507059e+37 }
 0x23f   : > { %v835_v45 = vadd.f32 %v2543_v56, %v834_v44  ;;  %1250 = vmatmul.bf16.gmra.mxu3 %v1175_v42  ;;  %v1009_v48 = vmul.f32 %v1996_v34, %v1008_v43 }
 0x241   : > { %v1998_v46 = vpop.eup %1997  ;;  %v1786_v47 = vmul.f32 -1.442695, %v835_v45  ;;  %v1010_v52 = vadd.f32 %v1996_v34, %v1009_v48 }
 0x242   : > { %v2000_v49 = vpop.eup %1999  ;;  %v2591_v50 = vadd.f32 1.0, %v1998_v46 }
 0x243   : > { %2001 = vpow2.f32 %v1786_v47  ;;  %v1022_v51 = vmul.f32 %v2000_v49, %v907_v35  ;;  %vm1027_vm10 = vweird.f32 %v2000_v49  ;;  %v1014_v1 = vsel %vm2598_vm11, %v1996_v34, %v1010_v52 }
 0x244   : > { %2003 = vrcp.f32 %v2591_v50  ;;  %vm1028_vm14 = vmor %vm1026_vm12, %vm1027_vm10  ;;  %v1019_v9 = vsel %vm1016_vm13, %v1018_v5, %v1014_v1  ;;  %vm1041_vm1 = vweird.f32 %v2591_v50  ;;  %v1045_v24 = vand.u32 2147483647, %v2591_v50 }
 0x245   : > { %v1023_v53 = vsub.f32 1.0, %v1022_v51  ;;  %v1047_v25 = vand.u32 2147483648, %v2591_v50 }
 0x246   : > { %v837_v54 = vpop.f32.mrf.mxu2  ;;  %vm1046_vm5 = vcmp.eq.f32.partialorder %v1045_v24, 8.507059e+37 }
 0x247   : > { %v838_v59 = vadd.f32 %v2543_v56, %v837_v54  ;;  %v1024_v60 = vmul.f32 %v2000_v49, %v1023_v53  ;;  %v1048_v37 = vor.u32 1.1754944e-38, %v1047_v25 }
 0x249   : > { %v2002_v63 = vpop.eup %2001  ;;  %v1787_v0 = vmul.f32 -1.442695, %v838_v59  ;;  %v1025_v2 = vadd.f32 %v2000_v49, %v1024_v60 }
 0x24a   : > { %v2004_v3 = vpop.eup %2003  ;;  %v909_v4 = vadd.f32 1.0, %v2002_v63 }
 0x24b   : > { %2005 = vpow2.f32 %v1787_v0  ;;  %v1029_v7 = vsel %vm1028_vm14, %v2000_v49, %v1025_v2  ;;  %v1037_v8 = vmul.f32 %v2004_v3, %v2591_v50  ;;  %vm1042_vm0 = vweird.f32 %v2004_v3 }
 0x24c   : > { %2007 = vrcp.f32 %v909_v4  ;;  %v1034_v10 = vsel %vm1031_vm15, %v1033_v6, %v1029_v7  ;;  %v1062_v26 = vand.u32 2147483648, %v909_v4  ;;  %v1060_v29 = vand.u32 2147483647, %v909_v4  ;;  %vm2613_vm3 = vmor %vm1041_vm1, %vm1042_vm0 }
 0x24d   : > { %v1176_v11 = vpack.c.bf16 %v1034_v10, %v1019_v9  ;;  %v1038_v12 = vsub.f32 1.0, %v1037_v8  ;;  %vm1056_vm4 = vweird.f32 %v909_v4 }
 0x24e   : > { %v839_v13 = vpop.f32.mrf.mxu2  ;;  %v1063_v38 = vor.u32 1.1754944e-38, %v1062_v26  ;;  %vm1061_vm7 = vcmp.eq.f32.partialorder %v1060_v29, 8.507059e+37 }
 0x24f   : > { %v840_v14 = vadd.f32 %v2543_v56, %v839_v13  ;;  %1255 = vmatmul.bf16.gmra.mxu3 %v1176_v11  ;;  %v1039_v17 = vmul.f32 %v2004_v3, %v1038_v12 }
 0x251   : > { %v2006_v15 = vpop.eup %2005  ;;  %v1788_v16 = vmul.f32 -1.442695, %v840_v14  ;;  %v1040_v21 = vadd.f32 %v2004_v3, %v1039_v17 }
 0x252   : > { %v2008_v18 = vpop.eup %2007  ;;  %v2606_v19 = vadd.f32 1.0, %v2006_v15 }
 0x253   : > { %2009 = vpow2.f32 %v1788_v16  ;;  %v1052_v20 = vmul.f32 %v2008_v18, %v909_v4  ;;  %vm1057_vm2 = vweird.f32 %v2008_v18  ;;  %v1044_v33 = vsel %vm2613_vm3, %v2004_v3, %v1040_v21 }
 0x254   : > { %2011 = vrcp.f32 %v2606_v19  ;;  %vm1058_vm6 = vmor %vm1056_vm4, %vm1057_vm2  ;;  %v1049_v41 = vsel %vm1046_vm5, %v1048_v37, %v1044_v33  ;;  %vm1071_vm9 = vweird.f32 %v2606_v19  ;;  %v1075_v57 = vand.u32 2147483647, %v2606_v19 }
 0x255   : > { %v1053_v22 = vsub.f32 1.0, %v1052_v20  ;;  %v1077_v58 = vand.u32 2147483648, %v2606_v19 }
 0x256   : > { %v842_v23 = vpop.f32.mrf.mxu2  ;;  %vm1076_vm13 = vcmp.eq.f32.partialorder %v1075_v57, 8.507059e+37 }
 0x257   : > { %v843_v27 = vadd.f32 %v2543_v56, %v842_v23  ;;  %v1054_v28 = vmul.f32 %v2008_v18, %v1053_v22  ;;  %v1078_v6 = vor.u32 1.1754944e-38, %v1077_v58 }
 0x259   : > { %v2010_v31 = vpop.eup %2009  ;;  %v1789_v32 = vmul.f32 -1.442695, %v843_v27  ;;  %v1055_v34 = vadd.f32 %v2008_v18, %v1054_v28 }
 0x25a   : > { %v2012_v35 = vpop.eup %2011  ;;  %v911_v36 = vadd.f32 1.0, %v2010_v31 }
 0x25b   : > { %2013 = vpow2.f32 %v1789_v32  ;;  %v1059_v39 = vsel %vm1058_vm6, %v2008_v18, %v1055_v34  ;;  %v1067_v40 = vmul.f32 %v2012_v35, %v2606_v19  ;;  %vm1072_vm8 = vweird.f32 %v2012_v35 }
 0x25c   : > { %2015 = vrcp.f32 %v911_v36  ;;  %v1064_v42 = vsel %vm1061_vm7, %v1063_v38, %v1059_v39  ;;  %v1092_v59 = vand.u32 2147483648, %v911_v36  ;;  %v1090_v62 = vand.u32 2147483647, %v911_v36  ;;  %vm2628_vm11 = vmor %vm1071_vm9, %vm1072_vm8 }
 0x25d   : > { %v1177_v43 = vpack.c.bf16 %v1064_v42, %v1049_v41  ;;  %v1068_v44 = vsub.f32 1.0, %v1067_v40  ;;  %vm1086_vm12 = vweird.f32 %v911_v36 }
 0x25e   : > { %v844_v45 = vpop.f32.mrf.mxu2  ;;  %v1093_v7 = vor.u32 1.1754944e-38, %v1092_v59  ;;  %vm1091_vm15 = vcmp.eq.f32.partialorder %v1090_v62, 8.507059e+37 }
 0x25f   : > { %v845_v46 = vadd.f32 %v2543_v56, %v844_v45  ;;  %1260 = vmatmul.bf16.gmra.mxu3 %v1177_v43  ;;  %v1069_v49 = vmul.f32 %v2012_v35, %v1068_v44 }
 0x261   : > { %v2014_v47 = vpop.eup %2013  ;;  %v1790_v48 = vmul.f32 -1.442695, %v845_v46  ;;  %v1070_v53 = vadd.f32 %v2012_v35, %v1069_v49 }
 0x262   : > { %v2016_v50 = vpop.eup %2015  ;;  %v2621_v51 = vadd.f32 1.0, %v2014_v47 }
 0x263   : > { %2017 = vpow2.f32 %v1790_v48  ;;  %v1082_v52 = vmul.f32 %v2016_v50, %v911_v36  ;;  %vm1087_vm10 = vweird.f32 %v2016_v50  ;;  %v1074_v2 = vsel %vm2628_vm11, %v2012_v35, %v1070_v53 }
 0x264   : > { %2019 = vrcp.f32 %v2621_v51  ;;  %vm1088_vm14 = vmor %vm1086_vm12, %vm1087_vm10  ;;  %v1079_v10 = vsel %vm1076_vm13, %v1078_v6, %v1074_v2  ;;  %vm1101_vm1 = vweird.f32 %v2621_v51  ;;  %v1107_v24 = vand.u32 2147483648, %v2621_v51 }
 0x265   : > { %v1083_v54 = vsub.f32 1.0, %v1082_v52  ;;  %v1105_v26 = vand.u32 2147483647, %v2621_v51 }
 0x266   : > { %v847_v55 = vpop.f32.mrf.mxu2  ;;  %v1108_v34 = vor.u32 1.1754944e-38, %v1107_v24 }
 0x267   : > { %v848_v60 = vadd.f32 %v2543_v56, %v847_v55  ;;  %v1084_v61 = vmul.f32 %v2016_v50, %v1083_v54  ;;  %vm1106_vm6 = vcmp.eq.f32.partialorder %v1105_v26, 8.507059e+37 }
 0x269   : > { %v2018_v0 = vpop.eup %2017  ;;  %v1791_v1 = vmul.f32 -1.442695, %v848_v60  ;;  %v1085_v3 = vadd.f32 %v2016_v50, %v1084_v61  ;;  %v2648_v61 = vld [vmem:[%s2727_s8] ss:$0 sm:$0xff] }
 0x26a   : > { %v2020_v4 = vpop.eup %2019  ;;  %v913_v5 = vadd.f32 1.0, %v2018_v0 }
 0x26b   : > { %2021 = vpow2.f32 %v1791_v1  ;;  %v1089_v8 = vsel %vm1088_vm14, %v2016_v50, %v1085_v3  ;;  %v1097_v9 = vmul.f32 %v2020_v4, %v2621_v51  ;;  %vm1102_vm0 = vweird.f32 %v2020_v4 }
 0x26c   : > { %2023 = vrcp.f32 %v913_v5  ;;  %v1094_v11 = vsel %vm1091_vm15, %v1093_v7, %v1089_v8  ;;  %v1122_v25 = vand.u32 2147483648, %v913_v5  ;;  %v1120_v27 = vand.u32 2147483647, %v913_v5  ;;  %vm2639_vm3 = vmor %vm1101_vm1, %vm1102_vm0 }
 0x26d   : > { %v1178_v12 = vpack.c.bf16 %v1094_v11, %v1079_v10  ;;  %v1098_v13 = vsub.f32 1.0, %v1097_v9  ;;  %vm1116_vm4 = vweird.f32 %v913_v5 }
 0x26e   : > { %v849_v14 = vpop.f32.mrf.mxu2  ;;  %v1123_v35 = vor.u32 1.1754944e-38, %v1122_v25  ;;  %vm1121_vm7 = vcmp.eq.f32.partialorder %v1120_v27, 8.507059e+37 }
 0x26f   : > { %v850_v15 = vadd.f32 %v2543_v56, %v849_v14  ;;  %1265 = vmatmul.bf16.gmra.mxu3 %v1178_v12  ;;  %v1099_v18 = vmul.f32 %v2020_v4, %v1098_v13 }
 0x271   : > { %v2022_v16 = vpop.eup %2021  ;;  %v1792_v17 = vmul.f32 -1.442695, %v850_v15  ;;  %v1100_v22 = vadd.f32 %v2020_v4, %v1099_v18 }
 0x272   : > { %v2024_v19 = vpop.eup %2023  ;;  %v914_v20 = vadd.f32 1.0, %v2022_v16 }
 0x273   : > { %2025 = vpow2.f32 %v1792_v17  ;;  %v1112_v21 = vmul.f32 %v2024_v19, %v913_v5  ;;  %vm1117_vm2 = vweird.f32 %v2024_v19  ;;  %v1104_v30 = vsel %vm2639_vm3, %v2020_v4, %v1100_v22 }
 0x274   : > { %2027 = vrcp.f32 %v914_v20  ;;  %vm1118_vm5 = vmor %vm1116_vm4, %vm1117_vm2  ;;  %v1109_v38 = vsel %vm1106_vm6, %v1108_v34, %v1104_v30  ;;  %vm1131_vm9 = vweird.f32 %v914_v20  ;;  %v1137_v47 = vand.u32 2147483648, %v914_v20 }
 0x275   : > { %v1113_v23 = vsub.f32 1.0, %v1112_v21  ;;  %v1135_v49 = vand.u32 2147483647, %v914_v20 }
 0x276   : > { %v1138_v54 = vor.u32 1.1754944e-38, %v1137_v47 }
 0x277   : > { %v1114_v56 = vmul.f32 %v2024_v19, %v1113_v23  ;;  %vm1136_vm14 = vcmp.eq.f32.partialorder %v1135_v49, 8.507059e+37 }
 0x279   : > { %v2026_v29 = vpop.eup %2025  ;;  %v1115_v31 = vadd.f32 %v2024_v19, %v1114_v56 }
 0x27a   : > { %v2028_v32 = vpop.eup %2027  ;;  %v915_v33 = vadd.f32 1.0, %v2026_v29 }
 0x27b   : > { %v1119_v36 = vsel %vm1118_vm5, %v2024_v19, %v1115_v31  ;;  %v1127_v37 = vmul.f32 %v2028_v32, %v914_v20  ;;  %vm1132_vm8 = vweird.f32 %v2028_v32 }
 0x27c   : > { %2029 = vrcp.f32 %v915_v33  ;;  %v1124_v39 = vsel %vm1121_vm7, %v1123_v35, %v1119_v36  ;;  %v1152_v48 = vand.u32 2147483648, %v915_v33  ;;  %v1150_v51 = vand.u32 2147483647, %v915_v33  ;;  %vm1133_vm11 = vmor %vm1131_vm9, %vm1132_vm8 }
 0x27d   : > { %v1179_v40 = vpack.c.bf16 %v1124_v39, %v1109_v38  ;;  %v1128_v41 = vsub.f32 1.0, %v1127_v37  ;;  %vm1146_vm12 = vweird.f32 %v915_v33 }
 0x27e   : > { %v1153_v55 = vor.u32 1.1754944e-38, %v1152_v48  ;;  %vm1151_vm15 = vcmp.eq.f32.partialorder %v1150_v51, 8.507059e+37 }
 0x27f   : > { %1270 = vmatmul.bf16.gmra.mxu3 %v1179_v40  ;;  %v1129_v42 = vmul.f32 %v2028_v32, %v1128_v41 }
 0x281   : > { %v1130_v45 = vadd.f32 %v2028_v32, %v1129_v42 }
 0x282   : > { %v2030_v43 = vpop.eup %2029 }
 0x283   : > { %v1142_v44 = vmul.f32 %v2030_v43, %v915_v33  ;;  %vm1147_vm10 = vweird.f32 %v2030_v43  ;;  %v1134_v52 = vsel %vm1133_vm11, %v2028_v32, %v1130_v45 }
 0x284   : > { %vm1148_vm13 = vmor %vm1146_vm12, %vm1147_vm10  ;;  %v1139_v58 = vsel %vm1136_vm14, %v1138_v54, %v1134_v52 }
 0x285   : > { %v1143_v46 = vsub.f32 1.0, %v1142_v44 }
 0x287   : > { %v1144_v50 = vmul.f32 %v2030_v43, %v1143_v46 }
 0x289   : > { %v1145_v53 = vadd.f32 %v2030_v43, %v1144_v50 }
 0x28b   : > { %v1149_v57 = vsel %vm1148_vm13, %v2030_v43, %v1145_v53 }
 0x28c   : > { %v1154_v59 = vsel %vm1151_vm15, %v1153_v55, %v1149_v57 }
 0x28d   : > { %v1180_v60 = vpack.c.bf16 %v1154_v59, %v1139_v58 }
 0x28f   : > { %1275 = vmatmul.bf16.gmra.mxu3 %v1180_v60 }
 0x2a2   : > { %v1241_v62 = vpop.f32.mrf.mxu3 }
 0x2a3   : > { %v1242_v63 = vadd.f32 %v2648_v61, %v1241_v62 }
 0x2a5   : > { %v1297_v0 = vmul.f32 1.442695, %v1242_v63  ;;  %vm1281_vm1 = vcmp.gt.f32.partialorder %v1242_v63, 20.0 }
 0x2a7   : > { %2031 = vpow2.f32 %v1297_v0 }
 0x2aa   : > { %v1243_v1 = vpop.f32.mrf.mxu3 }
 0x2ab   : > { %v1244_v2 = vadd.f32 %v2648_v61, %v1243_v1 }
 0x2ad   : > { %v2032_v3 = vpop.eup %2031  ;;  %v1299_v4 = vmul.f32 1.442695, %v1244_v2  ;;  %vm1282_vm3 = vcmp.gt.f32.partialorder %v1244_v2, 20.0 }
 0x2ae   : > { %v1329_v5 = vadd.f32 1.0, %v2032_v3  ;;  %v1332_v6 = vmul.f32 -0.5, %v2032_v3  ;;  %v1335_v10 = vand.u32 2147483647, %v2032_v3 }
 0x2af   : > { %2033 = vpow2.f32 %v1299_v4 }
 0x2b0   : > { %2035 = vlog2.f32 %v1329_v5  ;;  %v1333_v8 = vadd.f32 1.0, %v1332_v6  ;;  %vm1336_vm0 = vcmp.lt.f32.partialorder %v1335_v10, 0.0004427343 }
 0x2b2   : > { %v1246_v7 = vpop.f32.mrf.mxu3  ;;  %v1334_v16 = vmul.f32 %v2032_v3, %v1333_v8 }
 0x2b3   : > { %v1247_v9 = vadd.f32 %v2648_v61, %v1246_v7 }
 0x2b5   : > { %v2034_v11 = vpop.eup %2033  ;;  %v1301_v12 = vmul.f32 1.442695, %v1247_v9  ;;  %vm1283_vm5 = vcmp.gt.f32.partialorder %v1247_v9, 20.0 }
 0x2b6   : > { %v2036_v13 = vpop.eup %2035  ;;  %v1338_v14 = vadd.f32 1.0, %v2034_v11  ;;  %v1341_v17 = vmul.f32 -0.5, %v2034_v11  ;;  %v1344_v23 = vand.u32 2147483647, %v2034_v11 }
 0x2b7   : > { %v1331_v15 = vmul.f32 0.6931472, %v2036_v13  ;;  %2037 = vpow2.f32 %v1301_v12 }
 0x2b8   : > { %2039 = vlog2.f32 %v1338_v14  ;;  %v1342_v21 = vadd.f32 1.0, %v1341_v17  ;;  %vm1345_vm2 = vcmp.lt.f32.partialorder %v1344_v23, 0.0004427343 }
 0x2b9   : > { %v1337_v18 = vsel %vm1336_vm0, %v1334_v16, %v1331_v15 }
 0x2ba   : > { %v1473_v19 = vsel %vm1281_vm1, %v1242_v63, %v1337_v18  ;;  %v1248_v20 = vpop.f32.mrf.mxu3  ;;  %v1343_v28 = vmul.f32 %v2034_v11, %v1342_v21 }
 0x2bb   : > { %1489 = vst [vmem:[%s2654_s23] sm:$0xff] %v1473_v19  ;;  %v1249_v22 = vadd.f32 %v2648_v61, %v1248_v20 }
 0x2bd   : > { %v2038_v24 = vpop.eup %2037  ;;  %v1303_v25 = vmul.f32 1.442695, %v1249_v22  ;;  %vm1284_vm7 = vcmp.gt.f32.partialorder %v1249_v22, 20.0 }
 0x2be   : > { %v2040_v26 = vpop.eup %2039  ;;  %v1347_v56 = vadd.f32 1.0, %v2038_v24  ;;  %v1350_v29 = vmul.f32 -0.5, %v2038_v24  ;;  %v1353_v35 = vand.u32 2147483647, %v2038_v24 }
 0x2bf   : > { %v1340_v27 = vmul.f32 0.6931472, %v2040_v26  ;;  %2041 = vpow2.f32 %v1303_v25 }
 0x2c0   : > { %2043 = vlog2.f32 %v1347_v56  ;;  %v1351_v33 = vadd.f32 1.0, %v1350_v29  ;;  %vm1354_vm4 = vcmp.lt.f32.partialorder %v1353_v35, 0.0004427343 }
 0x2c1   : > { %v1346_v30 = vsel %vm1345_vm2, %v1343_v28, %v1340_v27 }
 0x2c2   : > { %v1474_v31 = vsel %vm1282_vm3, %v1244_v2, %v1346_v30  ;;  %v1251_v32 = vpop.f32.mrf.mxu3  ;;  %v1352_v41 = vmul.f32 %v2038_v24, %v1351_v33 }
 0x2c3   : > { %1490 = vst [vmem:[%s2654_s23 + $0x8] sm:$0xff] %v1474_v31  ;;  %v1252_v34 = vadd.f32 %v2648_v61, %v1251_v32 }
 0x2c5   : > { %v2042_v36 = vpop.eup %2041  ;;  %v1305_v37 = vmul.f32 1.442695, %v1252_v34  ;;  %vm1285_vm9 = vcmp.gt.f32.partialorder %v1252_v34, 20.0 }
 0x2c6   : > { %v2044_v38 = vpop.eup %2043  ;;  %v1356_v39 = vadd.f32 1.0, %v2042_v36  ;;  %v1359_v42 = vmul.f32 -0.5, %v2042_v36  ;;  %v1362_v48 = vand.u32 2147483647, %v2042_v36 }
 0x2c7   : > { %v1349_v40 = vmul.f32 0.6931472, %v2044_v38  ;;  %2045 = vpow2.f32 %v1305_v37 }
 0x2c8   : > { %2047 = vlog2.f32 %v1356_v39  ;;  %v1360_v46 = vadd.f32 1.0, %v1359_v42  ;;  %vm1363_vm6 = vcmp.lt.f32.partialorder %v1362_v48, 0.0004427343 }
 0x2c9   : > { %v1355_v43 = vsel %vm1354_vm4, %v1352_v41, %v1349_v40 }
 0x2ca   : > { %v1475_v44 = vsel %vm1283_vm5, %v1247_v9, %v1355_v43  ;;  %v1253_v45 = vpop.f32.mrf.mxu3  ;;  %v1361_v54 = vmul.f32 %v2042_v36, %v1360_v46 }
 0x2cb   : > { %1491 = vst [vmem:[%s2654_s23 + $0x10] sm:$0xff] %v1475_v44  ;;  %v1254_v47 = vadd.f32 %v2648_v61, %v1253_v45 }
 0x2cd   : > { %v2046_v49 = vpop.eup %2045  ;;  %v1307_v50 = vmul.f32 1.442695, %v1254_v47  ;;  %vm1286_vm11 = vcmp.gt.f32.partialorder %v1254_v47, 20.0 }
 0x2ce   : > { %v2048_v51 = vpop.eup %2047  ;;  %v1365_v52 = vadd.f32 1.0, %v2046_v49  ;;  %v1368_v55 = vmul.f32 -0.5, %v2046_v49  ;;  %v1371_v63 = vand.u32 2147483647, %v2046_v49 }
 0x2cf   : > { %v1358_v53 = vmul.f32 0.6931472, %v2048_v51  ;;  %2049 = vpow2.f32 %v1307_v50 }
 0x2d0   : > { %2051 = vlog2.f32 %v1365_v52  ;;  %v1369_v60 = vadd.f32 1.0, %v1368_v55  ;;  %vm1372_vm8 = vcmp.lt.f32.partialorder %v1371_v63, 0.0004427343 }
 0x2d1   : > { %v1364_v57 = vsel %vm1363_vm6, %v1361_v54, %v1358_v53 }
 0x2d2   : > { %v1476_v58 = vsel %vm1284_vm7, %v1249_v22, %v1364_v57  ;;  %v1256_v59 = vpop.f32.mrf.mxu3  ;;  %v1370_v5 = vmul.f32 %v2046_v49, %v1369_v60 }
 0x2d3   : > { %1492 = vst [vmem:[%s2654_s23 + $0x18] sm:$0xff] %v1476_v58  ;;  %v1257_v62 = vadd.f32 %v2648_v61, %v1256_v59 }
 0x2d5   : > { %v2050_v0 = vpop.eup %2049  ;;  %v1309_v1 = vmul.f32 1.442695, %v1257_v62  ;;  %vm1287_vm13 = vcmp.gt.f32.partialorder %v1257_v62, 20.0 }
 0x2d6   : > { %v2052_v2 = vpop.eup %2051  ;;  %v1374_v3 = vadd.f32 1.0, %v2050_v0  ;;  %v1377_v6 = vmul.f32 -0.5, %v2050_v0  ;;  %v1380_v12 = vand.u32 2147483647, %v2050_v0 }
 0x2d7   : > { %v1367_v4 = vmul.f32 0.6931472, %v2052_v2  ;;  %2053 = vpow2.f32 %v1309_v1 }
 0x2d8   : > { %2055 = vlog2.f32 %v1374_v3  ;;  %v1378_v10 = vadd.f32 1.0, %v1377_v6  ;;  %vm1381_vm10 = vcmp.lt.f32.partialorder %v1380_v12, 0.0004427343 }
 0x2d9   : > { %v1373_v7 = vsel %vm1372_vm8, %v1370_v5, %v1367_v4 }
 0x2da   : > { %v1477_v8 = vsel %vm1285_vm9, %v1252_v34, %v1373_v7  ;;  %v1258_v9 = vpop.f32.mrf.mxu3  ;;  %v1379_v18 = vmul.f32 %v2050_v0, %v1378_v10 }
 0x2db   : > { %1493 = vst [vmem:[%s2654_s23 + $0x20] sm:$0xff] %v1477_v8  ;;  %v1259_v11 = vadd.f32 %v2648_v61, %v1258_v9 }
 0x2dd   : > { %v2054_v13 = vpop.eup %2053  ;;  %v1311_v14 = vmul.f32 1.442695, %v1259_v11  ;;  %vm1288_vm15 = vcmp.gt.f32.partialorder %v1259_v11, 20.0 }
 0x2de   : > { %v2056_v15 = vpop.eup %2055  ;;  %v1383_v16 = vadd.f32 1.0, %v2054_v13  ;;  %v1386_v19 = vmul.f32 -0.5, %v2054_v13  ;;  %v1389_v25 = vand.u32 2147483647, %v2054_v13 }
 0x2df   : > { %v1376_v17 = vmul.f32 0.6931472, %v2056_v15  ;;  %2057 = vpow2.f32 %v1311_v14 }
 0x2e0   : > { %2059 = vlog2.f32 %v1383_v16  ;;  %v1387_v23 = vadd.f32 1.0, %v1386_v19  ;;  %vm1390_vm12 = vcmp.lt.f32.partialorder %v1389_v25, 0.0004427343 }
 0x2e1   : > { %v1382_v20 = vsel %vm1381_vm10, %v1379_v18, %v1376_v17 }
 0x2e2   : > { %v1478_v21 = vsel %vm1286_vm11, %v1254_v47, %v1382_v20  ;;  %v1261_v22 = vpop.f32.mrf.mxu3  ;;  %v1388_v30 = vmul.f32 %v2054_v13, %v1387_v23 }
 0x2e3   : > { %1494 = vst [vmem:[%s2654_s23 + $0x28] sm:$0xff] %v1478_v21  ;;  %v1262_v24 = vadd.f32 %v2648_v61, %v1261_v22 }
 0x2e5   : > { %v2058_v26 = vpop.eup %2057  ;;  %v1313_v56 = vmul.f32 1.442695, %v1262_v24  ;;  %vm1289_vm1 = vcmp.gt.f32.partialorder %v1262_v24, 20.0 }
 0x2e6   : > { %v2060_v27 = vpop.eup %2059  ;;  %v1392_v28 = vadd.f32 1.0, %v2058_v26  ;;  %v1395_v31 = vmul.f32 -0.5, %v2058_v26  ;;  %v1398_v37 = vand.u32 2147483647, %v2058_v26 }
 0x2e7   : > { %v1385_v29 = vmul.f32 0.6931472, %v2060_v27  ;;  %2061 = vpow2.f32 %v1313_v56 }
 0x2e8   : > { %2063 = vlog2.f32 %v1392_v28  ;;  %v1396_v35 = vadd.f32 1.0, %v1395_v31  ;;  %vm1399_vm14 = vcmp.lt.f32.partialorder %v1398_v37, 0.0004427343 }
 0x2e9   : > { %v1391_v32 = vsel %vm1390_vm12, %v1388_v30, %v1385_v29 }
 0x2ea   : > { %v1479_v33 = vsel %vm1287_vm13, %v1257_v62, %v1391_v32  ;;  %v1263_v34 = vpop.f32.mrf.mxu3  ;;  %v1397_v43 = vmul.f32 %v2058_v26, %v1396_v35 }
 0x2eb   : > { %1495 = vst [vmem:[%s2654_s23 + $0x30] sm:$0xff] %v1479_v33  ;;  %v1264_v36 = vadd.f32 %v2648_v61, %v1263_v34 }
 0x2ed   : > { %v2062_v38 = vpop.eup %2061  ;;  %v1315_v39 = vmul.f32 1.442695, %v1264_v36  ;;  %vm1290_vm3 = vcmp.gt.f32.partialorder %v1264_v36, 20.0 }
 0x2ee   : > { %v2064_v40 = vpop.eup %2063  ;;  %v1401_v41 = vadd.f32 1.0, %v2062_v38  ;;  %v1404_v44 = vmul.f32 -0.5, %v2062_v38  ;;  %v1407_v50 = vand.u32 2147483647, %v2062_v38 }
 0x2ef   : > { %v1394_v42 = vmul.f32 0.6931472, %v2064_v40  ;;  %2065 = vpow2.f32 %v1315_v39 }
 0x2f0   : > { %2067 = vlog2.f32 %v1401_v41  ;;  %v1405_v48 = vadd.f32 1.0, %v1404_v44  ;;  %vm1408_vm0 = vcmp.lt.f32.partialorder %v1407_v50, 0.0004427343 }
 0x2f1   : > { %v1400_v45 = vsel %vm1399_vm14, %v1397_v43, %v1394_v42 }
 0x2f2   : > { %v1480_v46 = vsel %vm1288_vm15, %v1259_v11, %v1400_v45  ;;  %v1266_v47 = vpop.f32.mrf.mxu3  ;;  %v1406_v57 = vmul.f32 %v2062_v38, %v1405_v48 }
 0x2f3   : > { %1496 = vst [vmem:[%s2654_s23 + $0x38] sm:$0xff] %v1480_v46  ;;  %v1267_v49 = vadd.f32 %v2648_v61, %v1266_v47 }
 0x2f5   : > { %v2066_v51 = vpop.eup %2065  ;;  %v1317_v52 = vmul.f32 1.442695, %v1267_v49  ;;  %vm1291_vm5 = vcmp.gt.f32.partialorder %v1267_v49, 20.0 }
 0x2f6   : > { %v2068_v53 = vpop.eup %2067  ;;  %v1410_v54 = vadd.f32 1.0, %v2066_v51  ;;  %v1413_v58 = vmul.f32 -0.5, %v2066_v51  ;;  %v1416_v1 = vand.u32 2147483647, %v2066_v51 }
 0x2f7   : > { %v1403_v55 = vmul.f32 0.6931472, %v2068_v53  ;;  %2069 = vpow2.f32 %v1317_v52 }
 0x2f8   : > { %2071 = vlog2.f32 %v1410_v54  ;;  %v1414_v63 = vadd.f32 1.0, %v1413_v58  ;;  %vm1417_vm2 = vcmp.lt.f32.partialorder %v1416_v1, 0.0004427343 }
 0x2f9   : > { %v1409_v59 = vsel %vm1408_vm0, %v1406_v57, %v1403_v55 }
 0x2fa   : > { %v1481_v60 = vsel %vm1289_vm1, %v1262_v24, %v1409_v59  ;;  %v1268_v62 = vpop.f32.mrf.mxu3  ;;  %v1415_v7 = vmul.f32 %v2066_v51, %v1414_v63 }
 0x2fb   : > { %1497 = vst [vmem:[%s2654_s23 + $0x40] sm:$0xff] %v1481_v60  ;;  %v1269_v0 = vadd.f32 %v2648_v61, %v1268_v62 }
 0x2fd   : > { %v2070_v2 = vpop.eup %2069  ;;  %v1319_v3 = vmul.f32 1.442695, %v1269_v0  ;;  %vm1292_vm7 = vcmp.gt.f32.partialorder %v1269_v0, 20.0 }
 0x2fe   : > { %v2072_v4 = vpop.eup %2071  ;;  %v1419_v5 = vadd.f32 1.0, %v2070_v2  ;;  %v1422_v8 = vmul.f32 -0.5, %v2070_v2  ;;  %v1425_v14 = vand.u32 2147483647, %v2070_v2 }
 0x2ff   : > { %v1412_v6 = vmul.f32 0.6931472, %v2072_v4  ;;  %2073 = vpow2.f32 %v1319_v3 }
 0x300   : > { %2075 = vlog2.f32 %v1419_v5  ;;  %v1423_v12 = vadd.f32 1.0, %v1422_v8  ;;  %vm1426_vm4 = vcmp.lt.f32.partialorder %v1425_v14, 0.0004427343 }
 0x301   : > { %v1418_v9 = vsel %vm1417_vm2, %v1415_v7, %v1412_v6 }
 0x302   : > { %v1482_v10 = vsel %vm1290_vm3, %v1264_v36, %v1418_v9  ;;  %v1271_v11 = vpop.f32.mrf.mxu3  ;;  %v1424_v20 = vmul.f32 %v2070_v2, %v1423_v12 }
 0x303   : > { %1498 = vst [vmem:[%s2654_s23 + $0x48] sm:$0xff] %v1482_v10  ;;  %v1272_v13 = vadd.f32 %v2648_v61, %v1271_v11 }
 0x305   : > { %v2074_v15 = vpop.eup %2073  ;;  %v1321_v16 = vmul.f32 1.442695, %v1272_v13  ;;  %vm1293_vm9 = vcmp.gt.f32.partialorder %v1272_v13, 20.0 }
 0x306   : > { %v2076_v17 = vpop.eup %2075  ;;  %v1428_v18 = vadd.f32 1.0, %v2074_v15  ;;  %v1431_v21 = vmul.f32 -0.5, %v2074_v15  ;;  %v1434_v56 = vand.u32 2147483647, %v2074_v15 }
 0x307   : > { %v1421_v19 = vmul.f32 0.6931472, %v2076_v17  ;;  %2077 = vpow2.f32 %v1321_v16 }
 0x308   : > { %2079 = vlog2.f32 %v1428_v18  ;;  %v1432_v25 = vadd.f32 1.0, %v1431_v21  ;;  %vm1435_vm6 = vcmp.lt.f32.partialorder %v1434_v56, 0.0004427343 }
 0x309   : > { %v1427_v22 = vsel %vm1426_vm4, %v1424_v20, %v1421_v19 }
 0x30a   : > { %v1483_v23 = vsel %vm1291_vm5, %v1267_v49, %v1427_v22  ;;  %v1273_v24 = vpop.f32.mrf.mxu3  ;;  %v1433_v32 = vmul.f32 %v2074_v15, %v1432_v25 }
 0x30b   : > { %1499 = vst [vmem:[%s2654_s23 + $0x50] sm:$0xff] %v1483_v23  ;;  %v1274_v26 = vadd.f32 %v2648_v61, %v1273_v24 }
 0x30d   : > { %v2078_v27 = vpop.eup %2077  ;;  %v1323_v28 = vmul.f32 1.442695, %v1274_v26  ;;  %vm1294_vm11 = vcmp.gt.f32.partialorder %v1274_v26, 20.0 }
 0x30e   : > { %v2080_v29 = vpop.eup %2079  ;;  %v1437_v30 = vadd.f32 1.0, %v2078_v27  ;;  %v1440_v33 = vmul.f32 -0.5, %v2078_v27  ;;  %v1443_v39 = vand.u32 2147483647, %v2078_v27 }
 0x30f   : > { %v1430_v31 = vmul.f32 0.6931472, %v2080_v29  ;;  %2081 = vpow2.f32 %v1323_v28 }
 0x310   : > { %2083 = vlog2.f32 %v1437_v30  ;;  %v1441_v37 = vadd.f32 1.0, %v1440_v33  ;;  %vm1444_vm8 = vcmp.lt.f32.partialorder %v1443_v39, 0.0004427343 }
 0x311   : > { %v1436_v34 = vsel %vm1435_vm6, %v1433_v32, %v1430_v31 }
 0x312   : > { %v1484_v35 = vsel %vm1292_vm7, %v1269_v0, %v1436_v34  ;;  %v1276_v36 = vpop.f32.mrf.mxu3  ;;  %v1442_v45 = vmul.f32 %v2078_v27, %v1441_v37 }
 0x313   : > { %1500 = vst [vmem:[%s2654_s23 + $0x58] sm:$0xff] %v1484_v35  ;;  %v1277_v38 = vadd.f32 %v2648_v61, %v1276_v36 }
 0x315   : > { %v2082_v40 = vpop.eup %2081  ;;  %v1325_v41 = vmul.f32 1.442695, %v1277_v38  ;;  %vm1295_vm13 = vcmp.gt.f32.partialorder %v1277_v38, 20.0 }
 0x316   : > { %v2084_v42 = vpop.eup %2083  ;;  %v1446_v43 = vadd.f32 1.0, %v2082_v40  ;;  %v1449_v46 = vmul.f32 -0.5, %v2082_v40  ;;  %v1452_v52 = vand.u32 2147483647, %v2082_v40 }
 0x317   : > { %v1439_v44 = vmul.f32 0.6931472, %v2084_v42  ;;  %2085 = vpow2.f32 %v1325_v41 }
 0x318   : > { %2087 = vlog2.f32 %v1446_v43  ;;  %v1450_v50 = vadd.f32 1.0, %v1449_v46  ;;  %vm1453_vm10 = vcmp.lt.f32.partialorder %v1452_v52, 0.0004427343 }
 0x319   : > { %v1445_v47 = vsel %vm1444_vm8, %v1442_v45, %v1439_v44 }
 0x31a   : > { %v1485_v48 = vsel %vm1293_vm9, %v1272_v13, %v1445_v47  ;;  %v1278_v49 = vpop.f32.mrf.mxu3  ;;  %v1451_v59 = vmul.f32 %v2082_v40, %v1450_v50 }
 0x31b   : > { %1501 = vst [vmem:[%s2654_s23 + $0x60] sm:$0xff] %v1485_v48  ;;  %v1279_v51 = vadd.f32 %v2648_v61, %v1278_v49 }
 0x31d   : > { %v2086_v53 = vpop.eup %2085  ;;  %v1327_v54 = vmul.f32 1.442695, %v1279_v51  ;;  %vm1296_vm15 = vcmp.gt.f32.partialorder %v1279_v51, 20.0 }
 0x31e   : > { %v2088_v55 = vpop.eup %2087  ;;  %v1455_v57 = vadd.f32 1.0, %v2086_v53  ;;  %v1458_v60 = vmul.f32 -0.5, %v2086_v53  ;;  %v1461_v1 = vand.u32 2147483647, %v2086_v53 }
 0x31f   : > { %v1448_v58 = vmul.f32 0.6931472, %v2088_v55  ;;  %2089 = vpow2.f32 %v1327_v54 }
 0x320   : > { %2091 = vlog2.f32 %v1455_v57  ;;  %v1459_v0 = vadd.f32 1.0, %v1458_v60  ;;  %vm1462_vm12 = vcmp.lt.f32.partialorder %v1461_v1, 0.0004427343 }
 0x321   : > { %v1454_v62 = vsel %vm1453_vm10, %v1451_v59, %v1448_v58 }
 0x322   : > { %v1486_v63 = vsel %vm1294_vm11, %v1274_v26, %v1454_v62  ;;  %v1460_v5 = vmul.f32 %v2086_v53, %v1459_v0 }
 0x323   : > { %1502 = vst [vmem:[%s2654_s23 + $0x68] sm:$0xff] %v1486_v63 }
 0x325   : > { %v2090_v61 = vpop.eup %2089 }
 0x326   : > { %v2092_v2 = vpop.eup %2091  ;;  %v1464_v3 = vadd.f32 1.0, %v2090_v61  ;;  %v1467_v6 = vmul.f32 -0.5, %v2090_v61  ;;  %v1470_v10 = vand.u32 2147483647, %v2090_v61 }
 0x327   : > { %v1457_v4 = vmul.f32 0.6931472, %v2092_v2 }
 0x328   : > { %2093 = vlog2.f32 %v1464_v3  ;;  %v1468_v9 = vadd.f32 1.0, %v1467_v6  ;;  %vm1471_vm14 = vcmp.lt.f32.partialorder %v1470_v10, 0.0004427343 }
 0x329   : > { %v1463_v7 = vsel %vm1462_vm12, %v1460_v5, %v1457_v4 }
 0x32a   : > { %v1487_v8 = vsel %vm1295_vm13, %v1277_v38, %v1463_v7  ;;  %v1469_v13 = vmul.f32 %v2090_v61, %v1468_v9 }
 0x32b   : > { %1503 = vst [vmem:[%s2654_s23 + $0x70] sm:$0xff] %v1487_v8 }
 0x32e   : > { %v2094_v11 = vpop.eup %2093 }
 0x32f   : > { %v1466_v12 = vmul.f32 0.6931472, %v2094_v11 }
 0x331   : > { %v1472_v14 = vsel %vm1471_vm14, %v1469_v13, %v1466_v12 }
 0x332   : > { %v1488_v15 = vsel %vm1296_vm15, %v1279_v51, %v1472_v14 }
 0x333   : > { %1504 = vst [vmem:[%s2654_s23 + $0x78] sm:$0xff] %v1488_v15 }
 0x334   : > { %2272 = shalt.err (!%p2269_p10)
}
 0x335   : > { %s2327_s24 = smov 128   ;;  %s2328_s23 = smov 8  }
 0x336   : > { %1890 = dma.vmem_to_hbm [thread:$0]  (%p2475_p3), %s1519_s1, 2048, %s1521_s15, %s1506_s13, %s2327_s24, %s2327_s24, %s2328_s23  }
 0x337 PF: > { %s1535_s26 = sand.u32 1, %s2307_s30   ;;  %p2759_p12 = scmp.ge.s32.totalorder %s2319_s12, 2 }
 0x338   : > { %s1536_s3 = scalar_lea.sflag [#allocation4], %s1535_s26 }
 0x339   : > { %p1910_p13 = pnand %p2759_p12, %p2414_p6 }
 0x33b   : > { %p1911_p0 = pneg %p1910_p13 }
 0x33d   : > { %2302 = dma.done.wait (%p1911_p0), %s1536_s3, 2048  }
 0x33e   : > { %2304 = vsyncadd (%p1911_p0), %s1536_s3, 4294965248  ;;  %p24_p5 = scmp.ge.s32.totalorder %s2465_s14, 4   ;;  %s2760_s30 = smov %s2311_s10 }
 0x33f   : > { %s2761_s10 = smov %s2315_s11  ;;  %s2762_s11 = smov %s2481_s22 }
 0x340   : > { %s2763_s12 = smov %s2465_s14  ;;  %26 = sbr.rel (!%p24_p5) target bundleno = 11 (0xb), region = 117 }
 0x345   :  { %1542 = vsyncpa [#allocation3], 1 }
 0x346   :  { %1544 = vsyncpa [#allocation3 + $0x1], 1 }
 0x347   :  { %1545 = vsyncpa [#allocation6], 1 }
 0x348   :  { %1546 = vsyncpa [#allocation9], 1 }
 0x349   :  { %1547 = vsyncpa [#allocation4], 1 }
 0x34a   :  { %1549 = vsyncpa [#allocation4 + $0x1], 1 }

</bundles_post_ra>
